<compile_context>
chip_gen: v6e
topology: v6e:2x2x1
jax: 0.10.0
libtpu: 0.0.40
codegen_flags: <defaults>
</compile_context>

<pallas_src>
import functools

import jax
import jax.numpy as jnp
import numpy as np
from jax.experimental import pallas as pl
from jax.experimental.pallas import tpu as pltpu  # noqa: F401  (kept for TPU-specific params if scaled up)

# ----------------------------- configuration -------------------------------
B = 2            # batch
C_IN = 8         # in_channels
C_OUT = 4        # out_channels
L = 16           # sequence length
NUM_GROUPS = 4   # GroupNorm groups (must divide C_IN)
NUM_LAYERS = 2   # number of ResnetBlock1d layers
FACTOR = 2       # upsample factor (kernel specialized to factor=2 transposed conv)
GN_EPS = 1e-5


# ------------------------------ fused Pallas kernel -------------------------
def fused_kernel(x_ref, gind_ref, gn_g_ref, gn_b_ref, w_ref, cb_ref,
                 up_w_ref, up_b_ref, o_ref, *, num_layers, cpg):
    """Whole UpsampleBlock1d forward for the full batch, single invocation (grid=()).

    x_ref:    (B, L, C)                 channels-last activation
    gind_ref: (C, C)                    group indicator (1 if two channels share a GN group)
    gn_g_ref, gn_b_ref, cb_ref: (2*num_layers, 1, C)   GN gamma/beta, conv bias per conv block
    w_ref:    (2*num_layers, 3C, C)     stacked conv taps [w(t-1); w(t); w(t+1)]
    up_w_ref: (3C, 2*C_OUT)             fused ConvTranspose1d weight, cols = [even | odd]
    up_b_ref: (1, 2*C_OUT)
    o_ref:    (B, L, 2*C_OUT)           [even-phase | odd-phase] per input position
    """
    x = x_ref[...]
    gind = gind_ref[...]
    bsz, l, c = x.shape
    inv_n = 1.0 / (l * cpg)

    def tri_cat(a):
        # [a[t-1] | a[t] | a[t+1]] with zero boundaries per batch, flattened to (B*L, 3C).
        zero = jnp.zeros((bsz, 1, c), a.dtype)
        ap = jnp.concatenate([zero, a, zero], axis=1)                        # (B, L+2, C)
        cat = jnp.concatenate([ap[:, :l, :], ap[:, 1:l + 1, :], ap[:, 2:, :]],
                              axis=-1)                                        # (B, L, 3C)
        return cat.reshape(bsz * l, 3 * c)

    def gn_silu_conv(h, idx):
        # GroupNorm stats: per-(batch, group) sums of h and h^2 with ONE small matmul.
        s = jnp.concatenate([jnp.sum(h, axis=1), jnp.sum(h * h, axis=1)], axis=0)  # (2B, C)
        g = jnp.dot(s, gind, preferred_element_type=jnp.float32) * inv_n           # (2B, C)
        mean, msq = g[:bsz], g[bsz:]
        # TODO(synk): E[x^2]-E[x]^2 variance; switch to two-pass if activations get large.
        var = msq - mean * mean
        scale = jax.lax.rsqrt(var + GN_EPS) * gn_g_ref[idx]                  # (B, C)
        shift = gn_b_ref[idx] - mean * scale                                 # (B, C)
        y = h * scale[:, None, :] + shift[:, None, :]                        # GN + affine (one FMA)
        a = y * (1.0 / (1.0 + jnp.exp(-y)))                                  # SiLU
        # Conv1d(k=3, padding=1) as a single matmul over the stacked taps (+ fused bias).
        out = (jnp.dot(tri_cat(a), w_ref[idx], preferred_element_type=jnp.float32)
               + cb_ref[idx])                                                # (B*L, C)
        return out.reshape(bsz, l, c)

    h = x
    for layer in range(num_layers):
        r = gn_silu_conv(h, 2 * layer)
        r = gn_silu_conv(r, 2 * layer + 1)
        h = r + h                                   # to_out is Identity (in == out channels)

    # ConvTranspose1d(k=4, stride=2, padding=1), both output phases in one matmul:
    #   out[2m]   = h[m] @ W1 + h[m-1] @ W3 + b
    #   out[2m+1] = h[m] @ W2 + h[m+1] @ W0 + b
    up = (jnp.dot(tri_cat(h), up_w_ref[...], preferred_element_type=jnp.float32)
          + up_b_ref[...])                                                   # (B*L, 2*C_OUT)
    o_ref[...] = up.reshape(bsz, l, up.shape[-1])


# ------------------------------ wrapper --------------------------------------
def group_indicator(c, groups):
    cpg = c // groups
    gid = jnp.arange(c) // cpg
    return (gid[:, None] == gid[None, :]).astype(jnp.float32)


def _pack_params(params, c):
    gn_g, gn_b, w_cat, cb = [], [], [], []
    for p in params["blocks"]:
        for gw, gb, cw, cbv in ((p["gn1_w"], p["gn1_b"], p["conv1_w"], p["conv1_b"]),
                                (p["gn2_w"], p["gn2_b"], p["conv2_w"], p["conv2_b"])):
            gn_g.append(gw.reshape(1, c))
            gn_b.append(gb.reshape(1, c))
            # torch Conv1d weight (Co, Ci, K) -> (K, Ci, Co) -> stacked taps (3C, C)
            w_cat.append(jnp.transpose(cw, (2, 1, 0)).reshape(3 * c, c))
            cb.append(cbv.reshape(1, c))
    gn_g = jnp.stack(gn_g)
    gn_b = jnp.stack(gn_b)
    w_cat = jnp.stack(w_cat)
    cb = jnp.stack(cb)

    # Fused ConvTranspose1d(k=4, s=2, p=1) weight: operand rows [h[m-1] | h[m] | h[m+1]],
    # output cols [even-phase | odd-phase].  torch weight shape (Ci, Co, K).
    wt = params["up"]["w"]
    cout = wt.shape[1]
    w0, w1, w2, w3 = (wt[:, :, k] for k in range(4))
    z = jnp.zeros((c, cout), jnp.float32)
    up_w = jnp.concatenate([
        jnp.concatenate([w3, z], axis=1),   # rows multiplying h[m-1]
        jnp.concatenate([w1, w2], axis=1),  # rows multiplying h[m]
        jnp.concatenate([z, w0], axis=1),   # rows multiplying h[m+1]
    ], axis=0)                               # (3C, 2*C_OUT)
    up_b = jnp.concatenate([params["up"]["b"], params["up"]["b"]]).reshape(1, 2 * cout)
    return gn_g, gn_b, w_cat, cb, up_w, up_b


@jax.jit
def upsample_block1d_forward(x_bcl, params):
    """x_bcl: (B, C_in, L) PyTorch NCL layout.  Returns (B, C_out, FACTOR*L)."""
    assert FACTOR == 2, "kernel is specialized to factor=2 ConvTranspose1d"
    # TODO(synk): use_nearest=True and factor != 2 Upsample1d variants not implemented.
    b, c, l = x_bcl.shape
    x = jnp.transpose(x_bcl, (0, 2, 1))                  # -> (B, L, C) channels-last
    gind = group_indicator(c, NUM_GROUPS)
    gn_g, gn_b, w_cat, cb, up_w, up_b = _pack_params(params, c)
    cout = up_w.shape[1] // 2

    # Single fused pallas_call, no grid: whole batch + all layer weights in VMEM at once.
    out = pl.pallas_call(
        functools.partial(fused_kernel, num_layers=NUM_LAYERS, cpg=c // NUM_GROUPS),
        out_shape=jax.ShapeDtypeStruct((b, l, 2 * cout), jnp.float32),
    )(x, gind, gn_g, gn_b, w_cat, cb, up_w, up_b)

    # Even/odd interleave + back to NCL, fused into the single layout-conversion op.
    return jnp.transpose(out.reshape(b, l, 2, cout), (0, 3, 1, 2)).reshape(b, cout, 2 * l)


# ---------------------- deterministic parameter init ------------------------
def init_params(key):
    blocks = []
    for i in range(NUM_LAYERS):
        ks = jax.random.split(jax.random.fold_in(key, i), 8)
        blocks.append(dict(
            gn1_w=1.0 + 0.1 * jax.random.normal(ks[0], (C_IN,), jnp.float32),
            gn1_b=0.1 * jax.random.normal(ks[1], (C_IN,), jnp.float32),
            conv1_w=0.2 * jax.random.normal(ks[2], (C_IN, C_IN, 3), jnp.float32),
            conv1_b=0.1 * jax.random.normal(ks[3], (C_IN,), jnp.float32),
            gn2_w=1.0 + 0.1 * jax.random.normal(ks[4], (C_IN,), jnp.float32),
            gn2_b=0.1 * jax.random.normal(ks[5], (C_IN,), jnp.float32),
            conv2_w=0.2 * jax.random.normal(ks[6], (C_IN, C_IN, 3), jnp.float32),
            conv2_b=0.1 * jax.random.normal(ks[7], (C_IN,), jnp.float32),
        ))
    ku = jax.random.split(jax.random.fold_in(key, 1000), 2)
    up = dict(
        w=0.2 * jax.random.normal(ku[0], (C_IN, C_OUT, 2 * FACTOR), jnp.float32),  # torch ConvTranspose1d shape
        b=0.1 * jax.random.normal(ku[1], (C_OUT,), jnp.float32),
    )
    return dict(blocks=blocks, up=up)


# --------------------------- pure-JAX reference ------------------------------
def ref_group_norm(x, gamma, beta, groups, eps=GN_EPS):
    b, c, l = x.shape
    xg = x.reshape(b, groups, (c // groups) * l)
    mean = xg.mean(axis=-1, keepdims=True)
    var = xg.var(axis=-1, keepdims=True)
    xn = ((xg - mean) / jnp.sqrt(var + eps)).reshape(b, c, l)
    return xn * gamma[None, :, None] + beta[None, :, None]


def ref_conv1d(x, w, bias):
    _, _, l = x.shape
    xp = jnp.pad(x, ((0, 0), (0, 0), (1, 1)))
    cols = jnp.stack([xp[:, :, k:k + l] for k in range(3)], axis=-1)  # (B, Ci, L, 3)
    return jnp.einsum("bilk,oik->bol", cols, w, precision="highest") + bias[None, :, None]


def ref_conv_transpose1d(x, w, bias, stride, padding):
    b, _, l = x.shape
    _, co, k = w.shape
    full_len = (l - 1) * stride + k
    full = jnp.zeros((b, co, full_len), jnp.float32)
    for kk in range(k):
        contrib = jnp.einsum("bil,io->bol", x, w[:, :, kk], precision="highest")
        full = full.at[:, :, kk:kk + (l - 1) * stride + 1:stride].add(contrib)
    return full[:, :, padding:full_len - padding] + bias[None, :, None]


def ref_forward(x, params):
    for p in params["blocks"]:
        h = ref_conv1d(jax.nn.silu(ref_group_norm(x, p["gn1_w"], p["gn1_b"], NUM_GROUPS)),
                       p["conv1_w"], p["conv1_b"])
        h = ref_conv1d(jax.nn.silu(ref_group_norm(h, p["gn2_w"], p["gn2_b"], NUM_GROUPS)),
                       p["conv2_w"], p["conv2_b"])
        x = h + x
    return ref_conv_transpose1d(x, params["up"]["w"], params["up"]["b"],
                                stride=FACTOR, padding=FACTOR // 2 + FACTOR % 2)


# --------------------------------- main --------------------------------------
if __name__ == "__main__":
    key = jax.random.PRNGKey(0)
    params = init_params(jax.random.fold_in(key, 1))
    x = jax.random.normal(jax.random.fold_in(key, 2), (B, C_IN, L), dtype=jnp.float32)

    out = jax.block_until_ready(upsample_block1d_forward(x, params))
    assert out.shape == (B, C_OUT, FACTOR * L), out.shape

    ref = jax.block_until_ready(ref_forward(x, params))
    np.testing.assert_allclose(np.asarray(out), np.asarray(ref), rtol=1e-2, atol=1e-2)

    print("KERNEL_OK")
</pallas_src>

<mosaic_0001>
module attributes {stable_mosaic.version = 11 : i64} {
  func.func @fused_kernel(%arg0: memref<2x16x8xf32, #tpu.memory_space<vmem>>, %arg1: memref<8x8xf32, #tpu.memory_space<vmem>>, %arg2: memref<4x1x8xf32, #tpu.memory_space<vmem>>, %arg3: memref<4x1x8xf32, #tpu.memory_space<vmem>>, %arg4: memref<4x24x8xf32, #tpu.memory_space<vmem>>, %arg5: memref<4x1x8xf32, #tpu.memory_space<vmem>>, %arg6: memref<24x8xf32, #tpu.memory_space<vmem>>, %arg7: memref<1x8xf32, #tpu.memory_space<vmem>>, %arg8: memref<2x16x8xf32, #tpu.memory_space<vmem>>) attributes {dimension_semantics = [], scalar_prefetch = 0 : i64, scratch_operands = 0 : i64, tpu.core_type = #tpu.core_type<tc>} {
    %c0 = arith.constant 0 : index
    %c0_0 = arith.constant 0 : index
    %c0_1 = arith.constant 0 : index
    %0 = vector.load %arg0[%c0, %c0_0, %c0_1] : memref<2x16x8xf32, #tpu.memory_space<vmem>>, vector<2x16x8xf32>
    %c0_2 = arith.constant 0 : index
    %c0_3 = arith.constant 0 : index
    %1 = vector.load %arg1[%c0_2, %c0_3] : memref<8x8xf32, #tpu.memory_space<vmem>>, vector<8x8xf32>
    %cst = arith.constant dense<0.000000e+00> : vector<2x8xf32>
    %2 = vector.multi_reduction <add>, %0, %cst [1] : vector<2x16x8xf32> to vector<2x8xf32>
    %3 = arith.mulf %0, %0 : vector<2x16x8xf32>
    %cst_4 = arith.constant dense<0.000000e+00> : vector<2x8xf32>
    %4 = vector.multi_reduction <add>, %3, %cst_4 [1] : vector<2x16x8xf32> to vector<2x8xf32>
    %5 = tpu.concatenate %2, %4 in 0 : vector<2x8xf32>, vector<2x8xf32> -> vector<4x8xf32>
    %cst_5 = arith.constant dense<0.000000e+00> : vector<4x8xf32>
    %6 = tpu.matmul %5, %1, %cst_5 {dimension_numbers = #tpu.dot_dimension_numbers<[1], [0], [0], [1], [0, 0, 1, 1], [], []>} : vector<4x8xf32>, vector<8x8xf32>, vector<4x8xf32> -> vector<4x8xf32>
    %cst_6 = arith.constant 3.125000e-02 : f32
    %7 = vector.broadcast %cst_6 : f32 to vector<4x8xf32>
    %8 = arith.mulf %6, %7 : vector<4x8xf32>
    %9 = vector.extract_strided_slice %8 {offsets = [0, 0], sizes = [2, 8], strides = [1, 1]} : vector<4x8xf32> to vector<2x8xf32>
    %10 = vector.extract_strided_slice %8 {offsets = [2, 0], sizes = [2, 8], strides = [1, 1]} : vector<4x8xf32> to vector<2x8xf32>
    %11 = arith.mulf %9, %9 : vector<2x8xf32>
    %12 = arith.subf %10, %11 : vector<2x8xf32>
    %cst_7 = arith.constant 9.99999974E-6 : f32
    %13 = vector.broadcast %cst_7 : f32 to vector<2x8xf32>
    %14 = arith.addf %12, %13 : vector<2x8xf32>
    %15 = math.rsqrt %14 : vector<2x8xf32>
    %c0_8 = arith.constant 0 : index
    %c0_9 = arith.constant 0 : index
    %c0_10 = arith.constant 0 : index
    %16 = vector.load %arg2[%c0_8, %c0_9, %c0_10] : memref<4x1x8xf32, #tpu.memory_space<vmem>>, vector<1x1x8xf32>
    %17 = vector.shape_cast %16 : vector<1x1x8xf32> to vector<1x8xf32>
    %18 = vector.broadcast %17 : vector<1x8xf32> to vector<2x8xf32>
    %19 = arith.mulf %15, %18 : vector<2x8xf32>
    %c0_11 = arith.constant 0 : index
    %c0_12 = arith.constant 0 : index
    %c0_13 = arith.constant 0 : index
    %20 = vector.load %arg3[%c0_11, %c0_12, %c0_13] : memref<4x1x8xf32, #tpu.memory_space<vmem>>, vector<1x1x8xf32>
    %21 = vector.shape_cast %20 : vector<1x1x8xf32> to vector<1x8xf32>
    %22 = arith.mulf %9, %19 : vector<2x8xf32>
    %23 = vector.broadcast %21 : vector<1x8xf32> to vector<2x8xf32>
    %24 = arith.subf %23, %22 : vector<2x8xf32>
    %25 = vector.shape_cast %19 : vector<2x8xf32> to vector<2x1x8xf32>
    %26 = vector.broadcast %25 : vector<2x1x8xf32> to vector<2x16x8xf32>
    %27 = arith.mulf %0, %26 : vector<2x16x8xf32>
    %28 = vector.shape_cast %24 : vector<2x8xf32> to vector<2x1x8xf32>
    %29 = vector.broadcast %28 : vector<2x1x8xf32> to vector<2x16x8xf32>
    %30 = arith.addf %27, %29 : vector<2x16x8xf32>
    %cst_14 = arith.constant 0.000000e+00 : f32
    %31 = vector.broadcast %cst_14 : f32 to vector<2x16x8xf32>
    %32 = arith.subf %31, %30 : vector<2x16x8xf32>
    %33 = math.exp %32 : vector<2x16x8xf32>
    %cst_15 = arith.constant 1.000000e+00 : f32
    %34 = vector.broadcast %cst_15 : f32 to vector<2x16x8xf32>
    %35 = arith.addf %34, %33 : vector<2x16x8xf32>
    %cst_16 = arith.constant 1.000000e+00 : f32
    %36 = vector.broadcast %cst_16 : f32 to vector<2x16x8xf32>
    %37 = arith.divf %36, %35 : vector<2x16x8xf32>
    %38 = arith.mulf %30, %37 : vector<2x16x8xf32>
    %cst_17 = arith.constant 0.000000e+00 : f32
    %39 = vector.broadcast %cst_17 : f32 to vector<2x1x8xf32>
    %40 = tpu.concatenate %39, %38, %39 in 1 : vector<2x1x8xf32>, vector<2x16x8xf32>, vector<2x1x8xf32> -> vector<2x18x8xf32>
    %41 = vector.extract_strided_slice %40 {offsets = [0, 0, 0], sizes = [2, 16, 8], strides = [1, 1, 1]} : vector<2x18x8xf32> to vector<2x16x8xf32>
    %42 = vector.extract_strided_slice %40 {offsets = [0, 1, 0], sizes = [2, 16, 8], strides = [1, 1, 1]} : vector<2x18x8xf32> to vector<2x16x8xf32>
    %43 = vector.extract_strided_slice %40 {offsets = [0, 2, 0], sizes = [2, 16, 8], strides = [1, 1, 1]} : vector<2x18x8xf32> to vector<2x16x8xf32>
    %44 = tpu.concatenate %41, %42, %43 in 2 : vector<2x16x8xf32>, vector<2x16x8xf32>, vector<2x16x8xf32> -> vector<2x16x24xf32>
    %45 = vector.shape_cast %44 : vector<2x16x24xf32> to vector<32x24xf32>
    %c0_18 = arith.constant 0 : index
    %c0_19 = arith.constant 0 : index
    %c0_20 = arith.constant 0 : index
    %46 = vector.load %arg4[%c0_18, %c0_19, %c0_20] : memref<4x24x8xf32, #tpu.memory_space<vmem>>, vector<1x24x8xf32>
    %47 = vector.shape_cast %46 : vector<1x24x8xf32> to vector<24x8xf32>
    %cst_21 = arith.constant dense<0.000000e+00> : vector<32x8xf32>
    %48 = tpu.matmul %45, %47, %cst_21 {dimension_numbers = #tpu.dot_dimension_numbers<[1], [0], [0], [1], [0, 0, 1, 1], [], []>} : vector<32x24xf32>, vector<24x8xf32>, vector<32x8xf32> -> vector<32x8xf32>
    %c0_22 = arith.constant 0 : index
    %c0_23 = arith.constant 0 : index
    %c0_24 = arith.constant 0 : index
    %49 = vector.load %arg5[%c0_22, %c0_23, %c0_24] : memref<4x1x8xf32, #tpu.memory_space<vmem>>, vector<1x1x8xf32>
    %50 = vector.shape_cast %49 : vector<1x1x8xf32> to vector<1x8xf32>
    %51 = vector.broadcast %50 : vector<1x8xf32> to vector<32x8xf32>
    %52 = arith.addf %48, %51 : vector<32x8xf32>
    %53 = vector.shape_cast %52 : vector<32x8xf32> to vector<2x16x8xf32>
    %cst_25 = arith.constant dense<0.000000e+00> : vector<2x8xf32>
    %54 = vector.multi_reduction <add>, %53, %cst_25 [1] : vector<2x16x8xf32> to vector<2x8xf32>
    %55 = arith.mulf %53, %53 : vector<2x16x8xf32>
    %cst_26 = arith.constant dense<0.000000e+00> : vector<2x8xf32>
    %56 = vector.multi_reduction <add>, %55, %cst_26 [1] : vector<2x16x8xf32> to vector<2x8xf32>
    %57 = tpu.concatenate %54, %56 in 0 : vector<2x8xf32>, vector<2x8xf32> -> vector<4x8xf32>
    %cst_27 = arith.constant dense<0.000000e+00> : vector<4x8xf32>
    %58 = tpu.matmul %57, %1, %cst_27 {dimension_numbers = #tpu.dot_dimension_numbers<[1], [0], [0], [1], [0, 0, 1, 1], [], []>} : vector<4x8xf32>, vector<8x8xf32>, vector<4x8xf32> -> vector<4x8xf32>
    %cst_28 = arith.constant 3.125000e-02 : f32
    %59 = vector.broadcast %cst_28 : f32 to vector<4x8xf32>
    %60 = arith.mulf %58, %59 : vector<4x8xf32>
    %61 = vector.extract_strided_slice %60 {offsets = [0, 0], sizes = [2, 8], strides = [1, 1]} : vector<4x8xf32> to vector<2x8xf32>
    %62 = vector.extract_strided_slice %60 {offsets = [2, 0], sizes = [2, 8], strides = [1, 1]} : vector<4x8xf32> to vector<2x8xf32>
    %63 = arith.mulf %61, %61 : vector<2x8xf32>
    %64 = arith.subf %62, %63 : vector<2x8xf32>
    %cst_29 = arith.constant 9.99999974E-6 : f32
    %65 = vector.broadcast %cst_29 : f32 to vector<2x8xf32>
    %66 = arith.addf %64, %65 : vector<2x8xf32>
    %67 = math.rsqrt %66 : vector<2x8xf32>
    %c1 = arith.constant 1 : index
    %c0_30 = arith.constant 0 : index
    %c0_31 = arith.constant 0 : index
    %68 = vector.load %arg2[%c1, %c0_30, %c0_31] : memref<4x1x8xf32, #tpu.memory_space<vmem>>, vector<1x1x8xf32>
    %69 = vector.shape_cast %68 : vector<1x1x8xf32> to vector<1x8xf32>
    %70 = vector.broadcast %69 : vector<1x8xf32> to vector<2x8xf32>
    %71 = arith.mulf %67, %70 : vector<2x8xf32>
    %c1_32 = arith.constant 1 : index
    %c0_33 = arith.constant 0 : index
    %c0_34 = arith.constant 0 : index
    %72 = vector.load %arg3[%c1_32, %c0_33, %c0_34] : memref<4x1x8xf32, #tpu.memory_space<vmem>>, vector<1x1x8xf32>
    %73 = vector.shape_cast %72 : vector<1x1x8xf32> to vector<1x8xf32>
    %74 = arith.mulf %61, %71 : vector<2x8xf32>
    %75 = vector.broadcast %73 : vector<1x8xf32> to vector<2x8xf32>
    %76 = arith.subf %75, %74 : vector<2x8xf32>
    %77 = vector.shape_cast %71 : vector<2x8xf32> to vector<2x1x8xf32>
    %78 = vector.broadcast %77 : vector<2x1x8xf32> to vector<2x16x8xf32>
    %79 = arith.mulf %53, %78 : vector<2x16x8xf32>
    %80 = vector.shape_cast %76 : vector<2x8xf32> to vector<2x1x8xf32>
    %81 = vector.broadcast %80 : vector<2x1x8xf32> to vector<2x16x8xf32>
    %82 = arith.addf %79, %81 : vector<2x16x8xf32>
    %cst_35 = arith.constant 0.000000e+00 : f32
    %83 = vector.broadcast %cst_35 : f32 to vector<2x16x8xf32>
    %84 = arith.subf %83, %82 : vector<2x16x8xf32>
    %85 = math.exp %84 : vector<2x16x8xf32>
    %cst_36 = arith.constant 1.000000e+00 : f32
    %86 = vector.broadcast %cst_36 : f32 to vector<2x16x8xf32>
    %87 = arith.addf %86, %85 : vector<2x16x8xf32>
    %cst_37 = arith.constant 1.000000e+00 : f32
    %88 = vector.broadcast %cst_37 : f32 to vector<2x16x8xf32>
    %89 = arith.divf %88, %87 : vector<2x16x8xf32>
    %90 = arith.mulf %82, %89 : vector<2x16x8xf32>
    %cst_38 = arith.constant 0.000000e+00 : f32
    %91 = vector.broadcast %cst_38 : f32 to vector<2x1x8xf32>
    %92 = tpu.concatenate %91, %90, %91 in 1 : vector<2x1x8xf32>, vector<2x16x8xf32>, vector<2x1x8xf32> -> vector<2x18x8xf32>
    %93 = vector.extract_strided_slice %92 {offsets = [0, 0, 0], sizes = [2, 16, 8], strides = [1, 1, 1]} : vector<2x18x8xf32> to vector<2x16x8xf32>
    %94 = vector.extract_strided_slice %92 {offsets = [0, 1, 0], sizes = [2, 16, 8], strides = [1, 1, 1]} : vector<2x18x8xf32> to vector<2x16x8xf32>
    %95 = vector.extract_strided_slice %92 {offsets = [0, 2, 0], sizes = [2, 16, 8], strides = [1, 1, 1]} : vector<2x18x8xf32> to vector<2x16x8xf32>
    %96 = tpu.concatenate %93, %94, %95 in 2 : vector<2x16x8xf32>, vector<2x16x8xf32>, vector<2x16x8xf32> -> vector<2x16x24xf32>
    %97 = vector.shape_cast %96 : vector<2x16x24xf32> to vector<32x24xf32>
    %c1_39 = arith.constant 1 : index
    %c0_40 = arith.constant 0 : index
    %c0_41 = arith.constant 0 : index
    %98 = vector.load %arg4[%c1_39, %c0_40, %c0_41] : memref<4x24x8xf32, #tpu.memory_space<vmem>>, vector<1x24x8xf32>
    %99 = vector.shape_cast %98 : vector<1x24x8xf32> to vector<24x8xf32>
    %cst_42 = arith.constant dense<0.000000e+00> : vector<32x8xf32>
    %100 = tpu.matmul %97, %99, %cst_42 {dimension_numbers = #tpu.dot_dimension_numbers<[1], [0], [0], [1], [0, 0, 1, 1], [], []>} : vector<32x24xf32>, vector<24x8xf32>, vector<32x8xf32> -> vector<32x8xf32>
    %c1_43 = arith.constant 1 : index
    %c0_44 = arith.constant 0 : index
    %c0_45 = arith.constant 0 : index
    %101 = vector.load %arg5[%c1_43, %c0_44, %c0_45] : memref<4x1x8xf32, #tpu.memory_space<vmem>>, vector<1x1x8xf32>
    %102 = vector.shape_cast %101 : vector<1x1x8xf32> to vector<1x8xf32>
    %103 = vector.broadcast %102 : vector<1x8xf32> to vector<32x8xf32>
    %104 = arith.addf %100, %103 : vector<32x8xf32>
    %105 = vector.shape_cast %104 : vector<32x8xf32> to vector<2x16x8xf32>
    %106 = arith.addf %105, %0 : vector<2x16x8xf32>
    %cst_46 = arith.constant dense<0.000000e+00> : vector<2x8xf32>
    %107 = vector.multi_reduction <add>, %106, %cst_46 [1] : vector<2x16x8xf32> to vector<2x8xf32>
    %108 = arith.mulf %106, %106 : vector<2x16x8xf32>
    %cst_47 = arith.constant dense<0.000000e+00> : vector<2x8xf32>
    %109 = vector.multi_reduction <add>, %108, %cst_47 [1] : vector<2x16x8xf32> to vector<2x8xf32>
    %110 = tpu.concatenate %107, %109 in 0 : vector<2x8xf32>, vector<2x8xf32> -> vector<4x8xf32>
    %cst_48 = arith.constant dense<0.000000e+00> : vector<4x8xf32>
    %111 = tpu.matmul %110, %1, %cst_48 {dimension_numbers = #tpu.dot_dimension_numbers<[1], [0], [0], [1], [0, 0, 1, 1], [], []>} : vector<4x8xf32>, vector<8x8xf32>, vector<4x8xf32> -> vector<4x8xf32>
    %cst_49 = arith.constant 3.125000e-02 : f32
    %112 = vector.broadcast %cst_49 : f32 to vector<4x8xf32>
    %113 = arith.mulf %111, %112 : vector<4x8xf32>
    %114 = vector.extract_strided_slice %113 {offsets = [0, 0], sizes = [2, 8], strides = [1, 1]} : vector<4x8xf32> to vector<2x8xf32>
    %115 = vector.extract_strided_slice %113 {offsets = [2, 0], sizes = [2, 8], strides = [1, 1]} : vector<4x8xf32> to vector<2x8xf32>
    %116 = arith.mulf %114, %114 : vector<2x8xf32>
    %117 = arith.subf %115, %116 : vector<2x8xf32>
    %cst_50 = arith.constant 9.99999974E-6 : f32
    %118 = vector.broadcast %cst_50 : f32 to vector<2x8xf32>
    %119 = arith.addf %117, %118 : vector<2x8xf32>
    %120 = math.rsqrt %119 : vector<2x8xf32>
    %c2 = arith.constant 2 : index
    %c0_51 = arith.constant 0 : index
    %c0_52 = arith.constant 0 : index
    %121 = vector.load %arg2[%c2, %c0_51, %c0_52] : memref<4x1x8xf32, #tpu.memory_space<vmem>>, vector<1x1x8xf32>
    %122 = vector.shape_cast %121 : vector<1x1x8xf32> to vector<1x8xf32>
    %123 = vector.broadcast %122 : vector<1x8xf32> to vector<2x8xf32>
    %124 = arith.mulf %120, %123 : vector<2x8xf32>
    %c2_53 = arith.constant 2 : index
    %c0_54 = arith.constant 0 : index
    %c0_55 = arith.constant 0 : index
    %125 = vector.load %arg3[%c2_53, %c0_54, %c0_55] : memref<4x1x8xf32, #tpu.memory_space<vmem>>, vector<1x1x8xf32>
    %126 = vector.shape_cast %125 : vector<1x1x8xf32> to vector<1x8xf32>
    %127 = arith.mulf %114, %124 : vector<2x8xf32>
    %128 = vector.broadcast %126 : vector<1x8xf32> to vector<2x8xf32>
    %129 = arith.subf %128, %127 : vector<2x8xf32>
    %130 = vector.shape_cast %124 : vector<2x8xf32> to vector<2x1x8xf32>
    %131 = vector.broadcast %130 : vector<2x1x8xf32> to vector<2x16x8xf32>
    %132 = arith.mulf %106, %131 : vector<2x16x8xf32>
    %133 = vector.shape_cast %129 : vector<2x8xf32> to vector<2x1x8xf32>
    %134 = vector.broadcast %133 : vector<2x1x8xf32> to vector<2x16x8xf32>
    %135 = arith.addf %132, %134 : vector<2x16x8xf32>
    %cst_56 = arith.constant 0.000000e+00 : f32
    %136 = vector.broadcast %cst_56 : f32 to vector<2x16x8xf32>
    %137 = arith.subf %136, %135 : vector<2x16x8xf32>
    %138 = math.exp %137 : vector<2x16x8xf32>
    %cst_57 = arith.constant 1.000000e+00 : f32
    %139 = vector.broadcast %cst_57 : f32 to vector<2x16x8xf32>
    %140 = arith.addf %139, %138 : vector<2x16x8xf32>
    %cst_58 = arith.constant 1.000000e+00 : f32
    %141 = vector.broadcast %cst_58 : f32 to vector<2x16x8xf32>
    %142 = arith.divf %141, %140 : vector<2x16x8xf32>
    %143 = arith.mulf %135, %142 : vector<2x16x8xf32>
    %cst_59 = arith.constant 0.000000e+00 : f32
    %144 = vector.broadcast %cst_59 : f32 to vector<2x1x8xf32>
    %145 = tpu.concatenate %144, %143, %144 in 1 : vector<2x1x8xf32>, vector<2x16x8xf32>, vector<2x1x8xf32> -> vector<2x18x8xf32>
    %146 = vector.extract_strided_slice %145 {offsets = [0, 0, 0], sizes = [2, 16, 8], strides = [1, 1, 1]} : vector<2x18x8xf32> to vector<2x16x8xf32>
    %147 = vector.extract_strided_slice %145 {offsets = [0, 1, 0], sizes = [2, 16, 8], strides = [1, 1, 1]} : vector<2x18x8xf32> to vector<2x16x8xf32>
    %148 = vector.extract_strided_slice %145 {offsets = [0, 2, 0], sizes = [2, 16, 8], strides = [1, 1, 1]} : vector<2x18x8xf32> to vector<2x16x8xf32>
    %149 = tpu.concatenate %146, %147, %148 in 2 : vector<2x16x8xf32>, vector<2x16x8xf32>, vector<2x16x8xf32> -> vector<2x16x24xf32>
    %150 = vector.shape_cast %149 : vector<2x16x24xf32> to vector<32x24xf32>
    %c2_60 = arith.constant 2 : index
    %c0_61 = arith.constant 0 : index
    %c0_62 = arith.constant 0 : index
    %151 = vector.load %arg4[%c2_60, %c0_61, %c0_62] : memref<4x24x8xf32, #tpu.memory_space<vmem>>, vector<1x24x8xf32>
    %152 = vector.shape_cast %151 : vector<1x24x8xf32> to vector<24x8xf32>
    %cst_63 = arith.constant dense<0.000000e+00> : vector<32x8xf32>
    %153 = tpu.matmul %150, %152, %cst_63 {dimension_numbers = #tpu.dot_dimension_numbers<[1], [0], [0], [1], [0, 0, 1, 1], [], []>} : vector<32x24xf32>, vector<24x8xf32>, vector<32x8xf32> -> vector<32x8xf32>
    %c2_64 = arith.constant 2 : index
    %c0_65 = arith.constant 0 : index
    %c0_66 = arith.constant 0 : index
    %154 = vector.load %arg5[%c2_64, %c0_65, %c0_66] : memref<4x1x8xf32, #tpu.memory_space<vmem>>, vector<1x1x8xf32>
    %155 = vector.shape_cast %154 : vector<1x1x8xf32> to vector<1x8xf32>
    %156 = vector.broadcast %155 : vector<1x8xf32> to vector<32x8xf32>
    %157 = arith.addf %153, %156 : vector<32x8xf32>
    %158 = vector.shape_cast %157 : vector<32x8xf32> to vector<2x16x8xf32>
    %cst_67 = arith.constant dense<0.000000e+00> : vector<2x8xf32>
    %159 = vector.multi_reduction <add>, %158, %cst_67 [1] : vector<2x16x8xf32> to vector<2x8xf32>
    %160 = arith.mulf %158, %158 : vector<2x16x8xf32>
    %cst_68 = arith.constant dense<0.000000e+00> : vector<2x8xf32>
    %161 = vector.multi_reduction <add>, %160, %cst_68 [1] : vector<2x16x8xf32> to vector<2x8xf32>
    %162 = tpu.concatenate %159, %161 in 0 : vector<2x8xf32>, vector<2x8xf32> -> vector<4x8xf32>
    %cst_69 = arith.constant dense<0.000000e+00> : vector<4x8xf32>
    %163 = tpu.matmul %162, %1, %cst_69 {dimension_numbers = #tpu.dot_dimension_numbers<[1], [0], [0], [1], [0, 0, 1, 1], [], []>} : vector<4x8xf32>, vector<8x8xf32>, vector<4x8xf32> -> vector<4x8xf32>
    %cst_70 = arith.constant 3.125000e-02 : f32
    %164 = vector.broadcast %cst_70 : f32 to vector<4x8xf32>
    %165 = arith.mulf %163, %164 : vector<4x8xf32>
    %166 = vector.extract_strided_slice %165 {offsets = [0, 0], sizes = [2, 8], strides = [1, 1]} : vector<4x8xf32> to vector<2x8xf32>
    %167 = vector.extract_strided_slice %165 {offsets = [2, 0], sizes = [2, 8], strides = [1, 1]} : vector<4x8xf32> to vector<2x8xf32>
    %168 = arith.mulf %166, %166 : vector<2x8xf32>
    %169 = arith.subf %167, %168 : vector<2x8xf32>
    %cst_71 = arith.constant 9.99999974E-6 : f32
    %170 = vector.broadcast %cst_71 : f32 to vector<2x8xf32>
    %171 = arith.addf %169, %170 : vector<2x8xf32>
    %172 = math.rsqrt %171 : vector<2x8xf32>
    %c3 = arith.constant 3 : index
    %c0_72 = arith.constant 0 : index
    %c0_73 = arith.constant 0 : index
    %173 = vector.load %arg2[%c3, %c0_72, %c0_73] : memref<4x1x8xf32, #tpu.memory_space<vmem>>, vector<1x1x8xf32>
    %174 = vector.shape_cast %173 : vector<1x1x8xf32> to vector<1x8xf32>
    %175 = vector.broadcast %174 : vector<1x8xf32> to vector<2x8xf32>
    %176 = arith.mulf %172, %175 : vector<2x8xf32>
    %c3_74 = arith.constant 3 : index
    %c0_75 = arith.constant 0 : index
    %c0_76 = arith.constant 0 : index
    %177 = vector.load %arg3[%c3_74, %c0_75, %c0_76] : memref<4x1x8xf32, #tpu.memory_space<vmem>>, vector<1x1x8xf32>
    %178 = vector.shape_cast %177 : vector<1x1x8xf32> to vector<1x8xf32>
    %179 = arith.mulf %166, %176 : vector<2x8xf32>
    %180 = vector.broadcast %178 : vector<1x8xf32> to vector<2x8xf32>
    %181 = arith.subf %180, %179 : vector<2x8xf32>
    %182 = vector.shape_cast %176 : vector<2x8xf32> to vector<2x1x8xf32>
    %183 = vector.broadcast %182 : vector<2x1x8xf32> to vector<2x16x8xf32>
    %184 = arith.mulf %158, %183 : vector<2x16x8xf32>
    %185 = vector.shape_cast %181 : vector<2x8xf32> to vector<2x1x8xf32>
    %186 = vector.broadcast %185 : vector<2x1x8xf32> to vector<2x16x8xf32>
    %187 = arith.addf %184, %186 : vector<2x16x8xf32>
    %cst_77 = arith.constant 0.000000e+00 : f32
    %188 = vector.broadcast %cst_77 : f32 to vector<2x16x8xf32>
    %189 = arith.subf %188, %187 : vector<2x16x8xf32>
    %190 = math.exp %189 : vector<2x16x8xf32>
    %cst_78 = arith.constant 1.000000e+00 : f32
    %191 = vector.broadcast %cst_78 : f32 to vector<2x16x8xf32>
    %192 = arith.addf %191, %190 : vector<2x16x8xf32>
    %cst_79 = arith.constant 1.000000e+00 : f32
    %193 = vector.broadcast %cst_79 : f32 to vector<2x16x8xf32>
    %194 = arith.divf %193, %192 : vector<2x16x8xf32>
    %195 = arith.mulf %187, %194 : vector<2x16x8xf32>
    %cst_80 = arith.constant 0.000000e+00 : f32
    %196 = vector.broadcast %cst_80 : f32 to vector<2x1x8xf32>
    %197 = tpu.concatenate %196, %195, %196 in 1 : vector<2x1x8xf32>, vector<2x16x8xf32>, vector<2x1x8xf32> -> vector<2x18x8xf32>
    %198 = vector.extract_strided_slice %197 {offsets = [0, 0, 0], sizes = [2, 16, 8], strides = [1, 1, 1]} : vector<2x18x8xf32> to vector<2x16x8xf32>
    %199 = vector.extract_strided_slice %197 {offsets = [0, 1, 0], sizes = [2, 16, 8], strides = [1, 1, 1]} : vector<2x18x8xf32> to vector<2x16x8xf32>
    %200 = vector.extract_strided_slice %197 {offsets = [0, 2, 0], sizes = [2, 16, 8], strides = [1, 1, 1]} : vector<2x18x8xf32> to vector<2x16x8xf32>
    %201 = tpu.concatenate %198, %199, %200 in 2 : vector<2x16x8xf32>, vector<2x16x8xf32>, vector<2x16x8xf32> -> vector<2x16x24xf32>
    %202 = vector.shape_cast %201 : vector<2x16x24xf32> to vector<32x24xf32>
    %c3_81 = arith.constant 3 : index
    %c0_82 = arith.constant 0 : index
    %c0_83 = arith.constant 0 : index
    %203 = vector.load %arg4[%c3_81, %c0_82, %c0_83] : memref<4x24x8xf32, #tpu.memory_space<vmem>>, vector<1x24x8xf32>
    %204 = vector.shape_cast %203 : vector<1x24x8xf32> to vector<24x8xf32>
    %cst_84 = arith.constant dense<0.000000e+00> : vector<32x8xf32>
    %205 = tpu.matmul %202, %204, %cst_84 {dimension_numbers = #tpu.dot_dimension_numbers<[1], [0], [0], [1], [0, 0, 1, 1], [], []>} : vector<32x24xf32>, vector<24x8xf32>, vector<32x8xf32> -> vector<32x8xf32>
    %c3_85 = arith.constant 3 : index
    %c0_86 = arith.constant 0 : index
    %c0_87 = arith.constant 0 : index
    %206 = vector.load %arg5[%c3_85, %c0_86, %c0_87] : memref<4x1x8xf32, #tpu.memory_space<vmem>>, vector<1x1x8xf32>
    %207 = vector.shape_cast %206 : vector<1x1x8xf32> to vector<1x8xf32>
    %208 = vector.broadcast %207 : vector<1x8xf32> to vector<32x8xf32>
    %209 = arith.addf %205, %208 : vector<32x8xf32>
    %210 = vector.shape_cast %209 : vector<32x8xf32> to vector<2x16x8xf32>
    %211 = arith.addf %210, %106 : vector<2x16x8xf32>
    %cst_88 = arith.constant 0.000000e+00 : f32
    %212 = vector.broadcast %cst_88 : f32 to vector<2x1x8xf32>
    %213 = tpu.concatenate %212, %211, %212 in 1 : vector<2x1x8xf32>, vector<2x16x8xf32>, vector<2x1x8xf32> -> vector<2x18x8xf32>
    %214 = vector.extract_strided_slice %213 {offsets = [0, 0, 0], sizes = [2, 16, 8], strides = [1, 1, 1]} : vector<2x18x8xf32> to vector<2x16x8xf32>
    %215 = vector.extract_strided_slice %213 {offsets = [0, 1, 0], sizes = [2, 16, 8], strides = [1, 1, 1]} : vector<2x18x8xf32> to vector<2x16x8xf32>
    %216 = vector.extract_strided_slice %213 {offsets = [0, 2, 0], sizes = [2, 16, 8], strides = [1, 1, 1]} : vector<2x18x8xf32> to vector<2x16x8xf32>
    %217 = tpu.concatenate %214, %215, %216 in 2 : vector<2x16x8xf32>, vector<2x16x8xf32>, vector<2x16x8xf32> -> vector<2x16x24xf32>
    %218 = vector.shape_cast %217 : vector<2x16x24xf32> to vector<32x24xf32>
    %c0_89 = arith.constant 0 : index
    %c0_90 = arith.constant 0 : index
    %219 = vector.load %arg6[%c0_89, %c0_90] : memref<24x8xf32, #tpu.memory_space<vmem>>, vector<24x8xf32>
    %cst_91 = arith.constant dense<0.000000e+00> : vector<32x8xf32>
    %220 = tpu.matmul %218, %219, %cst_91 {dimension_numbers = #tpu.dot_dimension_numbers<[1], [0], [0], [1], [0, 0, 1, 1], [], []>} : vector<32x24xf32>, vector<24x8xf32>, vector<32x8xf32> -> vector<32x8xf32>
    %c0_92 = arith.constant 0 : index
    %c0_93 = arith.constant 0 : index
    %221 = vector.load %arg7[%c0_92, %c0_93] : memref<1x8xf32, #tpu.memory_space<vmem>>, vector<1x8xf32>
    %222 = vector.broadcast %221 : vector<1x8xf32> to vector<32x8xf32>
    %223 = arith.addf %220, %222 : vector<32x8xf32>
    %224 = vector.shape_cast %223 : vector<32x8xf32> to vector<2x16x8xf32>
    %c0_94 = arith.constant 0 : index
    %c0_95 = arith.constant 0 : index
    %c0_96 = arith.constant 0 : index
    %225 = vector.load %arg8[%c0_94, %c0_95, %c0_96] : memref<2x16x8xf32, #tpu.memory_space<vmem>>, vector<2x16x8xf32>
    tpu.vector_store %arg8[%c0_94, %c0_95, %c0_96], %224 {strides = array<i32>} : memref<2x16x8xf32, #tpu.memory_space<vmem>>, vector<2x16x8xf32>,
    return
  }
}

</mosaic_0001>

<bundles_post_ra>
// kernel: upsample_block1d_forward.1
= control target key start
LH: loop header
LB: loop body
LE: loop exit
PB: predicated region body
PF: predicated region fallthrough
CT: control target
= control target key end

     0   :  { %vm34_vm0 = vcmask 64512   ;;  %v2253_v0 = vmov 0.0   ;;  %vm2254_vm1 = vmmov 0   ;;  %vm77_vm2 = vcmask 1041409   ;;  %s2256_s23 = smov 16   ;;  %s2257_s24 = smov 8   ;;  %s2802_s1 = inlined_call_operand.vmem [shape: f32[8,8], index: 1, kind: input, shape index: {}]   ;;  %s2803_s0 = inlined_call_operand.vmem [shape: f32[2,16,8], index: 0, kind: input, shape index: {}]   ;;  %s2804_s2 = inlined_call_operand.vmem [shape: f32[4,1,8], index: 2, kind: input, shape index: {}]   ;;  %s2805_s3 = inlined_call_operand.vmem [shape: f32[4,1,8], index: 3, kind: input, shape index: {}]   ;;  %s2806_s4 = inlined_call_operand.vmem [shape: f32[4,24,8], index: 4, kind: input, shape index: {}]   ;;  %s2807_s5 = inlined_call_operand.vmem [shape: f32[4,1,8], index: 5, kind: input, shape index: {}]   ;;  %s2808_s6 = inlined_call_operand.vmem [shape: f32[24,8], index: 6, kind: input, shape index: {}]   ;;  %s2809_s7 = inlined_call_operand.vmem [shape: f32[1,8], index: 7, kind: input, shape index: {}]   ;;  %s2810_s8 = inlined_call_operand.vmem [shape: f32[2,16,8], index: 8, kind: output, shape index: {}]  }
   0x1   :  { %2096 = vmatprep.subr.mxu1 %v2253_v0  ;;  %v2307_v1 = vld [vmem:[%s2802_s1] sm:$0xff]  ;;  %2098 = vmatprep.mubr.msk.f32.mxu1 %vm2254_vm1, %v2253_v0  ;;  %v2319_v3 = vld [vmem:[%s2803_s0 + $0x8] sm:$0xff]  ;;  %v2325_v4 = vld [vmem:[%s2803_s0 + $0x10] sm:$0xff]  ;;  %vm82_vm3 = vcmask 1043459   ;;  %vm85_vm4 = vcmask 1041408   ;;  %v191_v58 = vlaneseq  ;;  %vm295_vm5 = vcmask 1040384  }
   0x2   :  { %v2314_v2 = vld [vmem:[%s2803_s0] sm:$0xff]  ;;  %2097 = vmatpush3.msra.mxu1 %v2307_v1  ;;  %v2330_v5 = vld [vmem:[%s2803_s0 + $0x18] sm:$0xff]  ;;  %v36_v7 = vsel %vm34_vm0, %v2319_v3, 0.0  ;;  %v54_v9 = vmul.f32 %v2319_v3, %v2319_v3  ;;  %2113 = vmatprep.subr.mxu0 %v2253_v0  ;;  %v44_v11 = vsel %vm34_vm0, %v2325_v4, 0.0  ;;  %v55_v13 = vmul.f32 %v2325_v4, %v2325_v4 }
   0x3   :  { %v35_v6 = vsel %vm34_vm0, %v2314_v2, 0.0  ;;  %v53_v8 = vmul.f32 %v2314_v2, %v2314_v2  ;;  %v45_v12 = vsel %vm34_vm0, %v2330_v5, 0.0  ;;  %2114 = vmatpush3.msra.mxu0 %v2307_v1  ;;  %2115 = vmatprep.mubr.msk.f32.mxu0 %vm2254_vm1, %v2253_v0  ;;  %v56_v15 = vmul.f32 %v2330_v5, %v2330_v5  ;;  %v1999_v61 = vld [vmem:[%s2804_s2] ss:$0 sm:$0xff] }
   0x4   :  { %v37_v10 = vadd.f32 %v36_v7, %v35_v6  ;;  %v46_v14 = vadd.f32 %v45_v12, %v44_v11  ;;  %v58_v17 = vsel %vm34_vm0, %v54_v9, 0.0  ;;  %v66_v20 = vsel %vm34_vm0, %v55_v13, 0.0  ;;  %v2000_v9 = vld [vmem:[%s2805_s3] ss:$0 sm:$0xff] }
   0x5   :  { %v57_v16 = vsel %vm34_vm0, %v53_v8, 0.0  ;;  %v67_v22 = vsel %vm34_vm0, %v56_v15, 0.0  ;;  %v2255_v56 = vmov 1966171168   ;;  %v192_v60 = vshrl.u32 %v191_v58, 7 }
   0x6   :  { %v38_v18 = vrot.slane %v37_v10, 4  ;;  %v59_v19 = vadd.f32 %v58_v17, %v57_v16  ;;  %v47_v21 = vrot.slane %v46_v14, 4  ;;  %v68_v25 = vadd.f32 %v67_v22, %v66_v20 }
   0x7   :  { %v189_v57 = vunpack.c.l.s4 %v2255_v56  ;;  %v2370_v13 = vsub.s32 0, %v192_v60  ;;  %vm339_vm6 = vcmask 1045504   ;;  %vm316_vm7 = vcmask 1046528  }
   0x8   :  { %v39_v23 = vadd.f32 %v38_v18, %v37_v10  ;;  %v60_v24 = vrot.slane %v59_v19, 4  ;;  %v48_v26 = vadd.f32 %v47_v21, %v46_v14  ;;  %v69_v29 = vrot.slane %v68_v25, 4 }
   0x9   :  { %v190_v59 = vunpack.c.0.s8 %v189_v57  ;;  %v371_v57 = vld [vmem:[%s2806_s4] sm:$0xff]  ;;  %vm366_vm8 = vcmask 130048   ;;  %vm381_vm9 = vcmask 195584  }
   0xa   :  { %v40_v27 = vrot.slane %v39_v23, 2  ;;  %v61_v28 = vadd.f32 %v60_v24, %v59_v19  ;;  %v49_v30 = vrot.slane %v48_v26, 2  ;;  %v70_v33 = vadd.f32 %v69_v29, %v68_v25 }
   0xb   :  { %v2363_v62 = vsub.s32 %v190_v59, %v192_v60 }
   0xc   :  { %v41_v31 = vadd.f32 %v40_v27, %v39_v23  ;;  %v62_v32 = vrot.slane %v61_v28, 2  ;;  %v50_v34 = vadd.f32 %v49_v30, %v48_v26  ;;  %v71_v37 = vrot.slane %v70_v33, 2 }
   0xe   :  { %v42_v35 = vrot.slane %v41_v31, 1  ;;  %v63_v36 = vadd.f32 %v62_v32, %v61_v28  ;;  %v51_v38 = vrot.slane %v50_v34, 1  ;;  %v72_v41 = vadd.f32 %v71_v37, %v70_v33 }
  0x10   :  { %v43_v39 = vadd.f32 %v42_v35, %v41_v31  ;;  %v64_v40 = vrot.slane %v63_v36, 1  ;;  %v52_v42 = vadd.f32 %v51_v38, %v50_v34  ;;  %v73_v44 = vrot.slane %v72_v41, 1 }
  0x12   :  { %v65_v43 = vadd.f32 %v64_v40, %v63_v36  ;;  %v74_v45 = vadd.f32 %v73_v44, %v72_v41  ;;  %v78_v46 = vsel %vm77_vm2, %v52_v42, %v43_v39 }
  0x14   :  { %v83_v47 = vsel %vm82_vm3, %v74_v45, %v65_v43 }
  0x15   :  { %v86_v48 = vsel %vm85_vm4, %v78_v46, %v83_v47 }
  0x16   :  { %2099 = vmatmul.mubr.msk.f32.vlgmr.msra.gmra.mxu1 %vm34_vm0, %v86_v48 }
  0xd6   :  { %v156_v49 = vpop.f32.mrf.mxu1 }
  0xd7   :  { %v160_v50 = vmul.f32 0.03125, %v156_v49 }
  0xd8   :  { %v2100_v51 = vpop.f32.mrf.mxu1 }
  0xd9   :  { %v161_v52 = vmul.f32 %v160_v50, %v160_v50  ;;  %v372_v51 = vld [vmem:[%s2806_s4 + $0x8] sm:$0xff] }
  0xdb   :  { %v163_v53 = vrot.slane %v161_v52, 6 }
  0xdd   :  { %v165_v54 = vsub.f32 %v160_v50, %v163_v53 }
  0xdf   :  { %v166_v55 = vadd.f32 1e-05, %v165_v54 }
  0xe1   :  { %2181 = vrsqrt.f32 %v166_v55 }
  0xee   :  { %v2182_v63 = vpop.eup %2181 }
  0xef   :  { %v175_v6 = vmul.f32 %v2182_v63, %v1999_v61 }
  0xf1   :  { %v178_v7 = vrot.slane %v175_v6, 2  ;;  %v194_v8 = vrot.slane %v175_v6, %v2363_v62 }
  0xf3   :  { %v180_v10 = vmul.f32 %v178_v7, %v160_v50  ;;  %v195_v11 = vcombine.high %v194_v8, %v194_v8  ;;  %v202_v12 = vrot.slane %v194_v8, %v2363_v62  ;;  %v373_v50 = vld [vmem:[%s2806_s4 + $0x10] sm:$0xff] }
  0xf4   :  { %2101 = vmatprep.subr.mxu1 %v373_v50 }
  0xf5   :  { %v187_v14 = vsub.f32 %v2000_v9, %v180_v10  ;;  %v209_v15 = vrot.slane %v195_v11, %v2363_v62  ;;  %v210_v16 = vcombine.high %v202_v12, %v202_v12  ;;  %2102 = vmatpush3.msra.mxu1 %v373_v50 }
  0xf6   :  { %2103 = vmatprep.subr.mxu1 %v372_v51 }
  0xf7   :  { %v211_v17 = vcombine.high %v209_v15, %v209_v15  ;;  %v215_v18 = vrot.slane %v210_v16, %v2370_v13  ;;  %v233_v19 = vrot.slane %v187_v14, %v2363_v62  ;;  %2104 = vmatpush3.msra.mxu1 %v372_v51  ;;  %v2001_v51 = vld [vmem:[%s2807_s5] ss:$0 sm:$0xff] }
  0xf8   :  { %2105 = vmatprep.subr.mxu1 %v371_v57 }
  0xf9   :  { %v234_v20 = vcombine.high %v233_v19, %v233_v19  ;;  %v241_v21 = vrot.slane %v233_v19, %v2363_v62  ;;  %v219_v22 = vrot.slane %v211_v17, %v2370_v13  ;;  %v222_v25 = vmul.f32 %v215_v18, %v2314_v2  ;;  %2106 = vmatpush3.msra.mxu1 %v371_v57 }
  0xfa   :  { %v223_v26 = vmul.f32 %v215_v18, %v2319_v3  ;;  %2130 = vmatprep.subr.mxu1 %v2253_v0 }
  0xfb   :  { %v248_v23 = vrot.slane %v234_v20, %v2363_v62  ;;  %v252_v24 = vrot.slane %v241_v21, %v2370_v13  ;;  %v224_v27 = vmul.f32 %v219_v22, %v2325_v4  ;;  %v225_v30 = vmul.f32 %v219_v22, %v2330_v5 }
  0xfd   :  { %v259_v28 = vadd.f32 %v252_v24, %v222_v25  ;;  %v260_v29 = vadd.f32 %v252_v24, %v223_v26  ;;  %v256_v31 = vrot.slane %v248_v23, %v2370_v13 }
  0xff   :  { %v263_v32 = vsub.f32 0.0, %v259_v28  ;;  %v264_v33 = vsub.f32 0.0, %v260_v29  ;;  %v261_v34 = vadd.f32 %v256_v31, %v224_v27  ;;  %v262_v35 = vadd.f32 %v256_v31, %v225_v30 }
 0x101   :  { %v267_v36 = vmul.f32 1.442695, %v263_v32  ;;  %v269_v37 = vmul.f32 1.442695, %v264_v33  ;;  %v265_v38 = vsub.f32 0.0, %v261_v34  ;;  %v266_v39 = vsub.f32 0.0, %v262_v35 }
 0x103   :  { %2183 = vpow2.f32 %v267_v36  ;;  %v271_v40 = vmul.f32 1.442695, %v265_v38  ;;  %v273_v41 = vmul.f32 1.442695, %v266_v39 }
 0x104   :  { %2185 = vpow2.f32 %v269_v37 }
 0x105   :  { %2187 = vpow2.f32 %v271_v40 }
 0x106   :  { %2189 = vpow2.f32 %v273_v41 }
 0x110   :  { %v2184_v42 = vpop.eup %2183 }
 0x111   :  { %v2186_v43 = vpop.eup %2185  ;;  %v275_v44 = vadd.f32 1.0, %v2184_v42 }
 0x112   :  { %v2188_v45 = vpop.eup %2187  ;;  %v276_v46 = vadd.f32 1.0, %v2186_v43 }
 0x113   :  { %v2190_v47 = vpop.eup %2189  ;;  %2191 = vrcp.f32 %v275_v44  ;;  %v277_v48 = vadd.f32 1.0, %v2188_v45 }
 0x114   :  { %2193 = vrcp.f32 %v276_v46  ;;  %v278_v49 = vadd.f32 1.0, %v2190_v47 }
 0x115   :  { %2195 = vrcp.f32 %v277_v48 }
 0x116   :  { %2197 = vrcp.f32 %v278_v49 }
 0x120   :  { %v2192_v52 = vpop.eup %2191 }
 0x121   :  { %v2194_v53 = vpop.eup %2193  ;;  %v287_v54 = vmul.f32 %v2192_v52, %v259_v28 }
 0x122   :  { %v2196_v55 = vpop.eup %2195  ;;  %v288_v56 = vmul.f32 %v2194_v53, %v260_v29 }
 0x123   :  { %v2198_v58 = vpop.eup %2197  ;;  %v296_v59 = vrot.slane %v287_v54, 7  ;;  %v289_v60 = vmul.f32 %v2196_v55, %v261_v34 }
 0x124   :  { %v297_v61 = vrot.slane %v288_v56, 7  ;;  %v290_v63 = vmul.f32 %v2198_v58, %v262_v35 }
 0x125   :  { %v308_v6 = vsel %vm295_vm5, 0.0, %v296_v59  ;;  %v299_v7 = vrot.slane %v289_v60, 7 }
 0x126   :  { %v298_v8 = vsel %vm295_vm5, %v296_v59, %v297_v61  ;;  %v340_v9 = vrot.slane %v308_v6, 2  ;;  %v317_v10 = vrot.slane %v308_v6, 1  ;;  %v310_v11 = vsel %vm295_vm5, %v297_v61, 0.0 }
 0x127   :  { %v341_v12 = vrot.slane %v298_v8, 2  ;;  %v318_v14 = vrot.slane %v298_v8, 1  ;;  %v343_v15 = vrot.slane %v310_v11, 2  ;;  %v300_v16 = vrot.slane %v290_v63, 7 }
 0x128   :  { %v320_v19 = vrot.slane %v310_v11, 1  ;;  %v309_v22 = vsel %vm295_vm5, 0.0, %v299_v7 }
 0x129   :  { %v342_v17 = vsel %vm339_vm6, %v340_v9, %v341_v12  ;;  %v319_v18 = vsel %vm316_vm7, %v317_v10, %v318_v14  ;;  %v301_v20 = vsel %vm295_vm5, %v299_v7, %v300_v16  ;;  %v311_v21 = vsel %vm295_vm5, %v300_v16, 0.0 }
 0x12a   :  { %350 = vrot.lane.b32.xlu1 %v342_v17, %s2256_s23  ;;  %327 = vrot.lane.b32.xlu0 %v319_v18, %s2257_s24  ;;  %v344_v23 = vsel %vm339_vm6, %v341_v12, %v343_v15  ;;  %v321_v24 = vsel %vm316_vm7, %v318_v14, %v320_v19  ;;  %v323_v25 = vrot.slane %v301_v20, 1  ;;  %v325_v26 = vrot.slane %v311_v21, 1 }
 0x12b   :  { %v322_v27 = vrot.slane %v309_v22, 1  ;;  %v345_v28 = vrot.slane %v309_v22, 2  ;;  %v346_v31 = vrot.slane %v301_v20, 2  ;;  %v348_v32 = vrot.slane %v311_v21, 2 }
 0x12c   :  { %v326_v29 = vsel %vm316_vm7, %v323_v25, %v325_v26 }
 0x12d   :  { %v324_v30 = vsel %vm316_vm7, %v322_v27, %v323_v25  ;;  %v349_v33 = vsel %vm339_vm6, %v346_v31, %v348_v32  ;;  %v347_v34 = vsel %vm339_vm6, %v345_v28, %v346_v31 }
 0x12e   :  { %352 = vrot.lane.b32.xlu1 %v344_v23, %s2256_s23  ;;  %329 = vrot.lane.b32.xlu0 %v321_v24, %s2257_s24 }
 0x132   :  { %333 = vrot.lane.b32.xlu1 %v326_v29, %s2257_s24  ;;  %331 = vrot.lane.b32.xlu0 %v324_v30, %s2257_s24 }
 0x136   :  { %356 = vrot.lane.b32.xlu1 %v349_v33, %s2256_s23  ;;  %354 = vrot.lane.b32.xlu0 %v347_v34, %s2256_s23 }
 0x19c   :  { %v351_v35 = vpop.permute.xlu1 %350  ;;  %v328_v36 = vpop.permute.xlu0 %327 }
 0x19d   :  { %v362_v37 = vsel %vm34_vm0, %v308_v6, %v328_v36 }
 0x19e   :  { %v367_v38 = vsel %vm366_vm8, %v362_v37, %v351_v35 }
 0x19f   :  { %2107 = vmatprep.mubr.msk.f32.mxu1 %vm381_vm9, %v367_v38 }
 0x1a0   :  { %v353_v39 = vpop.permute.xlu1 %352  ;;  %v330_v40 = vpop.permute.xlu0 %329 }
 0x1a1   :  { %v363_v41 = vsel %vm34_vm0, %v298_v8, %v330_v40 }
 0x1a2   :  { %v368_v42 = vsel %vm366_vm8, %v363_v41, %v353_v39 }
 0x1a3   :  { %2108 = vmatmul.mubr.msk.f32.vlgmr.msra.gmra.mxu1 %vm381_vm9, %v368_v42 }
 0x1a4   :  { %v334_v43 = vpop.permute.xlu1 %333  ;;  %v332_v44 = vpop.permute.xlu0 %331  ;;  %2131 = vmatpush3.msra.mxu1 %v2307_v1 }
 0x1a5   :  { %2147 = vmatprep.subr.mxu1 %v2253_v0  ;;  %v365_v45 = vsel %vm34_vm0, %v301_v20, %v334_v43  ;;  %v364_v46 = vsel %vm34_vm0, %v309_v22, %v332_v44 }
 0x1a8   :  { %v357_v47 = vpop.permute.xlu1 %356  ;;  %v355_v48 = vpop.permute.xlu0 %354 }
 0x1a9   :  { %v370_v49 = vsel %vm366_vm8, %v365_v45, %v357_v47  ;;  %v369_v50 = vsel %vm366_vm8, %v364_v46, %v355_v48 }
 0x1aa   :  { %2110 = vmatprep.mubr.msk.f32.mxu1 %vm381_vm9, %v369_v50 }
 0x1ab   :  { %2111 = vmatmul.mubr.msk.f32.gmra.mxu1 %vm381_vm9, %v370_v49 }
 0x1ac   :  { %2132 = vmatprep.mubr.msk.f32.mxu1 %vm2254_vm1, %v2253_v0 }
 0x263   :  { %v2109_v52 = vpop.f32.mrf.mxu1 }
 0x264   :  { %v2435_v53 = vadd.f32 %v2109_v52, %v2001_v51 }
 0x265   :  { %v460_v54 = vpop.f32.mrf.mxu1 }
 0x266   :  { %v498_v55 = vmul.f32 %v2435_v53, %v2435_v53  ;;  %v2439_v56 = vadd.f32 %v2001_v51, %v460_v54  ;;  %v480_v57 = vsel %vm34_vm0, %v2435_v53, 0.0 }
 0x268   :  { %v479_v58 = vsel %vm34_vm0, %v2439_v56, 0.0  ;;  %v497_v59 = vmul.f32 %v2439_v56, %v2439_v56  ;;  %v502_v61 = vsel %vm34_vm0, %v498_v55, 0.0  ;;  %v2008_v55 = vld [vmem:[%s2804_s2 + $0x1] ss:$0 sm:$0xff] }
 0x269   :  { %v481_v60 = vadd.f32 %v480_v57, %v479_v58 }
 0x26a   :  { %v501_v63 = vsel %vm34_vm0, %v497_v59, 0.0 }
 0x26b   :  { %v482_v6 = vrot.slane %v481_v60, 4  ;;  %v503_v7 = vadd.f32 %v502_v61, %v501_v63  ;;  %v2112_v8 = vpop.f32.mrf.mxu1  ;;  %v2010_v61 = vld [vmem:[%s2805_s3 + $0x1] ss:$0 sm:$0xff] }
 0x26c   :  { %v2449_v9 = vadd.f32 %v2112_v8, %v2001_v51 }
 0x26d   :  { %v504_v10 = vrot.slane %v503_v7, 4  ;;  %v470_v11 = vpop.f32.mrf.mxu1  ;;  %v483_v15 = vadd.f32 %v482_v6, %v481_v60 }
 0x26e   :  { %v500_v12 = vmul.f32 %v2449_v9, %v2449_v9  ;;  %v2453_v14 = vadd.f32 %v2001_v51, %v470_v11  ;;  %v489_v17 = vsel %vm34_vm0, %v2449_v9, 0.0 }
 0x26f   :  { %v505_v16 = vadd.f32 %v504_v10, %v503_v7  ;;  %v484_v23 = vrot.slane %v483_v15, 2 }
 0x270   :  { %v488_v18 = vsel %vm34_vm0, %v2453_v14, 0.0  ;;  %v499_v19 = vmul.f32 %v2453_v14, %v2453_v14  ;;  %v511_v21 = vsel %vm34_vm0, %v500_v12, 0.0 }
 0x271   :  { %v490_v20 = vadd.f32 %v489_v17, %v488_v18  ;;  %v506_v24 = vrot.slane %v505_v16, 2  ;;  %v485_v29 = vadd.f32 %v484_v23, %v483_v15 }
 0x272   :  { %v510_v22 = vsel %vm34_vm0, %v499_v19, 0.0 }
 0x273   :  { %v491_v25 = vrot.slane %v490_v20, 4  ;;  %v512_v26 = vadd.f32 %v511_v21, %v510_v22  ;;  %v507_v30 = vadd.f32 %v506_v24, %v505_v16  ;;  %v486_v35 = vrot.slane %v485_v29, 1 }
 0x275   :  { %v492_v27 = vadd.f32 %v491_v25, %v490_v20  ;;  %v513_v28 = vrot.slane %v512_v26, 4  ;;  %v508_v38 = vrot.slane %v507_v30, 1  ;;  %v487_v41 = vadd.f32 %v486_v35, %v485_v29 }
 0x277   :  { %v493_v31 = vrot.slane %v492_v27, 2  ;;  %v514_v32 = vadd.f32 %v513_v28, %v512_v26  ;;  %v509_v42 = vadd.f32 %v508_v38, %v507_v30 }
 0x279   :  { %v494_v33 = vadd.f32 %v493_v31, %v492_v27  ;;  %v515_v34 = vrot.slane %v514_v32, 2 }
 0x27b   :  { %v495_v36 = vrot.slane %v494_v33, 1  ;;  %v516_v37 = vadd.f32 %v515_v34, %v514_v32 }
 0x27d   :  { %v496_v39 = vadd.f32 %v495_v36, %v494_v33  ;;  %v517_v40 = vrot.slane %v516_v37, 1 }
 0x27f   :  { %v518_v43 = vadd.f32 %v517_v40, %v516_v37  ;;  %v521_v44 = vsel %vm77_vm2, %v496_v39, %v487_v41 }
 0x281   :  { %v525_v45 = vsel %vm82_vm3, %v518_v43, %v509_v42  ;;  %v2013_v43 = vld [vmem:[%s2806_s4 + $0x28] sm:$0xff] }
 0x282   :  { %v527_v46 = vsel %vm85_vm4, %v521_v44, %v525_v45  ;;  %v2012_v44 = vld [vmem:[%s2806_s4 + $0x20] sm:$0xff]  ;;  %2118 = vmatprep.subr.mxu0 %v2013_v43 }
 0x283   :  { %2116 = vmatmul.mubr.msk.f32.vlgmr.msra.gmra.mxu0 %vm34_vm0, %v527_v46 }
 0x284   :  { %2119 = vmatpush3.msra.mxu0 %v2013_v43 }
 0x285   :  { %2120 = vmatprep.subr.mxu0 %v2012_v44 }
 0x286   :  { %2121 = vmatpush3.msra.mxu0 %v2012_v44  ;;  %v2015_v44 = vld [vmem:[%s2807_s5 + $0x1] ss:$0 sm:$0xff] }
 0x343   :  { %v597_v47 = vpop.f32.mrf.mxu0 }
 0x344   :  { %v601_v48 = vmul.f32 0.03125, %v597_v47 }
 0x345   :  { %v2117_v49 = vpop.f32.mrf.mxu0 }
 0x346   :  { %v602_v50 = vmul.f32 %v601_v48, %v601_v48 }
 0x348   :  { %v604_v51 = vrot.slane %v602_v50, 6 }
 0x34a   :  { %v606_v52 = vsub.f32 %v601_v48, %v604_v51 }
 0x34c   :  { %v607_v54 = vadd.f32 1e-05, %v606_v52 }
 0x34e   :  { %2199 = vrsqrt.f32 %v607_v54 }
 0x35b   :  { %v2200_v57 = vpop.eup %2199 }
 0x35c   :  { %v617_v58 = vmul.f32 %v2200_v57, %v2008_v55 }
 0x35e   :  { %v621_v59 = vrot.slane %v617_v58, 2  ;;  %v637_v60 = vrot.slane %v617_v58, %v2363_v62 }
 0x360   :  { %v623_v63 = vmul.f32 %v621_v59, %v601_v48  ;;  %v638_v6 = vcombine.high %v637_v60, %v637_v60  ;;  %v645_v7 = vrot.slane %v637_v60, %v2363_v62  ;;  %v2011_v48 = vld [vmem:[%s2806_s4 + $0x18] sm:$0xff] }
 0x361   :  { %2122 = vmatprep.subr.mxu0 %v2011_v48 }
 0x362   :  { %v630_v8 = vsub.f32 %v2010_v61, %v623_v63  ;;  %v652_v10 = vrot.slane %v638_v6, %v2363_v62  ;;  %v653_v11 = vcombine.high %v645_v7, %v645_v7  ;;  %2123 = vmatpush3.msra.mxu0 %v2011_v48 }
 0x364   :  { %v654_v12 = vcombine.high %v652_v10, %v652_v10  ;;  %v658_v15 = vrot.slane %v653_v11, %v2370_v13  ;;  %v676_v16 = vrot.slane %v630_v8, %v2363_v62 }
 0x366   :  { %v677_v17 = vcombine.high %v676_v16, %v676_v16  ;;  %v684_v18 = vrot.slane %v676_v16, %v2363_v62  ;;  %v662_v19 = vrot.slane %v654_v12, %v2370_v13  ;;  %v665_v20 = vmul.f32 %v658_v15, %v2439_v56 }
 0x367   :  { %v666_v23 = vmul.f32 %v658_v15, %v2435_v53 }
 0x368   :  { %v691_v21 = vrot.slane %v677_v17, %v2363_v62  ;;  %v695_v22 = vrot.slane %v684_v18, %v2370_v13  ;;  %v667_v24 = vmul.f32 %v662_v19, %v2453_v14  ;;  %v668_v27 = vmul.f32 %v662_v19, %v2449_v9 }
 0x36a   :  { %v702_v25 = vadd.f32 %v695_v22, %v665_v20  ;;  %v703_v26 = vadd.f32 %v695_v22, %v666_v23  ;;  %v699_v28 = vrot.slane %v691_v21, %v2370_v13 }
 0x36c   :  { %v706_v29 = vsub.f32 0.0, %v702_v25  ;;  %v707_v30 = vsub.f32 0.0, %v703_v26  ;;  %v704_v31 = vadd.f32 %v699_v28, %v667_v24  ;;  %v705_v32 = vadd.f32 %v699_v28, %v668_v27 }
 0x36e   :  { %v710_v33 = vmul.f32 1.442695, %v706_v29  ;;  %v712_v56 = vmul.f32 1.442695, %v707_v30  ;;  %v708_v34 = vsub.f32 0.0, %v704_v31  ;;  %v709_v35 = vsub.f32 0.0, %v705_v32 }
 0x370   :  { %2201 = vpow2.f32 %v710_v33  ;;  %v714_v36 = vmul.f32 1.442695, %v708_v34  ;;  %v716_v37 = vmul.f32 1.442695, %v709_v35 }
 0x371   :  { %2203 = vpow2.f32 %v712_v56 }
 0x372   :  { %2205 = vpow2.f32 %v714_v36 }
 0x373   :  { %2207 = vpow2.f32 %v716_v37 }
 0x37d   :  { %v2202_v53 = vpop.eup %2201 }
 0x37e   :  { %v2204_v14 = vpop.eup %2203  ;;  %v718_v38 = vadd.f32 1.0, %v2202_v53 }
 0x37f   :  { %v2206_v9 = vpop.eup %2205  ;;  %v719_v39 = vadd.f32 1.0, %v2204_v14 }
 0x380   :  { %v2208_v40 = vpop.eup %2207  ;;  %2209 = vrcp.f32 %v718_v38  ;;  %v720_v41 = vadd.f32 1.0, %v2206_v9 }
 0x381   :  { %2211 = vrcp.f32 %v719_v39  ;;  %v721_v42 = vadd.f32 1.0, %v2208_v40 }
 0x382   :  { %2213 = vrcp.f32 %v720_v41 }
 0x383   :  { %2215 = vrcp.f32 %v721_v42 }
 0x38d   :  { %v2210_v45 = vpop.eup %2209 }
 0x38e   :  { %v2212_v46 = vpop.eup %2211  ;;  %v730_v47 = vmul.f32 %v2210_v45, %v702_v25 }
 0x38f   :  { %v2214_v49 = vpop.eup %2213  ;;  %v731_v50 = vmul.f32 %v2212_v46, %v703_v26 }
 0x390   :  { %v2216_v51 = vpop.eup %2215  ;;  %v738_v52 = vrot.slane %v730_v47, 7  ;;  %v732_v54 = vmul.f32 %v2214_v49, %v704_v31 }
 0x391   :  { %v739_v55 = vrot.slane %v731_v50, 7  ;;  %v733_v57 = vmul.f32 %v2216_v51, %v705_v32 }
 0x392   :  { %v750_v58 = vsel %vm295_vm5, 0.0, %v738_v52  ;;  %v741_v63 = vrot.slane %v732_v54, 7 }
 0x393   :  { %v740_v59 = vsel %vm295_vm5, %v738_v52, %v739_v55  ;;  %v752_v60 = vsel %vm295_vm5, %v739_v55, 0.0  ;;  %v758_v61 = vrot.slane %v750_v58, 1  ;;  %v742_v11 = vrot.slane %v733_v57, 7 }
 0x394   :  { %v759_v6 = vrot.slane %v740_v59, 1  ;;  %v761_v7 = vrot.slane %v752_v60, 1  ;;  %v781_v8 = vrot.slane %v740_v59, 2  ;;  %v783_v10 = vrot.slane %v752_v60, 2 }
 0x395   :  { %v780_v16 = vrot.slane %v750_v58, 2  ;;  %v743_v17 = vsel %vm295_vm5, %v741_v63, %v742_v11  ;;  %v753_v18 = vsel %vm295_vm5, %v742_v11, 0.0  ;;  %v751_v19 = vsel %vm295_vm5, 0.0, %v741_v63 }
 0x396   :  { %v762_v12 = vsel %vm316_vm7, %v759_v6, %v761_v7  ;;  %v760_v15 = vsel %vm316_vm7, %v758_v61, %v759_v6  ;;  %v784_v20 = vsel %vm339_vm6, %v781_v8, %v783_v10  ;;  %v764_v22 = vrot.slane %v743_v17, 1 }
 0x397   :  { %770 = vrot.lane.b32.xlu1 %v762_v12, %s2257_s24  ;;  %768 = vrot.lane.b32.xlu0 %v760_v15, %s2257_s24  ;;  %v782_v21 = vsel %vm339_vm6, %v780_v16, %v781_v8  ;;  %v766_v23 = vrot.slane %v753_v18, 1  ;;  %v763_v24 = vrot.slane %v751_v19, 1  ;;  %v785_v25 = vrot.slane %v751_v19, 2 }
 0x398   :  { %v786_v28 = vrot.slane %v743_v17, 2  ;;  %v788_v29 = vrot.slane %v753_v18, 2 }
 0x399   :  { %v767_v26 = vsel %vm316_vm7, %v764_v22, %v766_v23  ;;  %v765_v27 = vsel %vm316_vm7, %v763_v24, %v764_v22 }
 0x39a   :  { %v789_v30 = vsel %vm339_vm6, %v786_v28, %v788_v29  ;;  %v787_v31 = vsel %vm339_vm6, %v785_v25, %v786_v28 }
 0x39b   :  { %792 = vrot.lane.b32.xlu1 %v784_v20, %s2256_s23  ;;  %790 = vrot.lane.b32.xlu0 %v782_v21, %s2256_s23 }
 0x39f   :  { %774 = vrot.lane.b32.xlu1 %v767_v26, %s2257_s24  ;;  %772 = vrot.lane.b32.xlu0 %v765_v27, %s2257_s24 }
 0x3a3   :  { %796 = vrot.lane.b32.xlu1 %v789_v30, %s2256_s23  ;;  %794 = vrot.lane.b32.xlu0 %v787_v31, %s2256_s23 }
 0x409   :  { %v771_v32 = vpop.permute.xlu1 %770  ;;  %v769_v33 = vpop.permute.xlu0 %768 }
 0x40a   :  { %v803_v56 = vsel %vm34_vm0, %v740_v59, %v771_v32  ;;  %v802_v34 = vsel %vm34_vm0, %v750_v58, %v769_v33 }
 0x40d   :  { %v793_v35 = vpop.permute.xlu1 %792  ;;  %v791_v36 = vpop.permute.xlu0 %790 }
 0x40e   :  { %v807_v37 = vsel %vm366_vm8, %v803_v56, %v793_v35  ;;  %v806_v53 = vsel %vm366_vm8, %v802_v34, %v791_v36 }
 0x40f   :  { %2124 = vmatprep.mubr.msk.f32.mxu0 %vm381_vm9, %v806_v53 }
 0x410   :  { %2125 = vmatmul.mubr.msk.f32.vlgmr.msra.gmra.mxu0 %vm381_vm9, %v807_v37 }
 0x411   :  { %v775_v14 = vpop.permute.xlu1 %774  ;;  %v773_v38 = vpop.permute.xlu0 %772 }
 0x412   :  { %v805_v9 = vsel %vm34_vm0, %v743_v17, %v775_v14  ;;  %v804_v39 = vsel %vm34_vm0, %v751_v19, %v773_v38 }
 0x415   :  { %v797_v40 = vpop.permute.xlu1 %796  ;;  %v795_v41 = vpop.permute.xlu0 %794 }
 0x416   :  { %v809_v42 = vsel %vm366_vm8, %v805_v9, %v797_v40  ;;  %v808_v43 = vsel %vm366_vm8, %v804_v39, %v795_v41 }
 0x417   :  { %2127 = vmatprep.mubr.msk.f32.mxu0 %vm381_vm9, %v808_v43 }
 0x418   :  { %2128 = vmatmul.mubr.msk.f32.gmra.mxu0 %vm381_vm9, %v809_v42 }
 0x4d0   :  { %v2126_v45 = vpop.f32.mrf.mxu0 }
 0x4d1   :  { %v906_v46 = vadd.f32 %v2126_v45, %v2015_v44 }
 0x4d2   :  { %v900_v47 = vpop.f32.mrf.mxu0 }
 0x4d3   :  { %v2534_v48 = vadd.f32 %v906_v46, %v2319_v3  ;;  %v901_v49 = vadd.f32 %v2015_v44, %v900_v47  ;;  %v2022_v47 = vld [vmem:[%s2804_s2 + $0x2] ss:$0 sm:$0xff] }
 0x4d5   :  { %v942_v50 = vmul.f32 %v2534_v48, %v2534_v48  ;;  %v2539_v51 = vadd.f32 %v901_v49, %v2314_v2  ;;  %v924_v52 = vsel %vm34_vm0, %v2534_v48, 0.0 }
 0x4d7   :  { %v923_v54 = vsel %vm34_vm0, %v2539_v51, 0.0  ;;  %v941_v55 = vmul.f32 %v2539_v51, %v2539_v51  ;;  %v946_v3 = vsel %vm34_vm0, %v942_v50, 0.0 }
 0x4d8   :  { %v925_v57 = vadd.f32 %v924_v52, %v923_v54  ;;  %v2129_v58 = vpop.f32.mrf.mxu0 }
 0x4d9   :  { %v945_v59 = vsel %vm34_vm0, %v941_v55, 0.0  ;;  %v916_v60 = vadd.f32 %v2129_v58, %v2015_v44 }
 0x4da   :  { %v926_v61 = vrot.slane %v925_v57, 4  ;;  %v947_v63 = vadd.f32 %v946_v3, %v945_v59  ;;  %v910_v2 = vpop.f32.mrf.mxu0 }
 0x4db   :  { %v2550_v6 = vadd.f32 %v916_v60, %v2330_v5  ;;  %v911_v7 = vadd.f32 %v2015_v44, %v910_v2 }
 0x4dc   :  { %v948_v8 = vrot.slane %v947_v63, 4  ;;  %v927_v12 = vadd.f32 %v926_v61, %v925_v57 }
 0x4dd   :  { %v944_v10 = vmul.f32 %v2550_v6, %v2550_v6  ;;  %v2555_v11 = vadd.f32 %v911_v7, %v2325_v4  ;;  %v933_v16 = vsel %vm34_vm0, %v2550_v6, 0.0 }
 0x4de   :  { %v949_v15 = vadd.f32 %v948_v8, %v947_v63  ;;  %v928_v21 = vrot.slane %v927_v12, 2 }
 0x4df   :  { %v932_v17 = vsel %vm34_vm0, %v2555_v11, 0.0  ;;  %v943_v5 = vmul.f32 %v2555_v11, %v2555_v11  ;;  %v955_v19 = vsel %vm34_vm0, %v944_v10, 0.0 }
 0x4e0   :  { %v934_v18 = vadd.f32 %v933_v16, %v932_v17  ;;  %v950_v22 = vrot.slane %v949_v15, 2  ;;  %v929_v26 = vadd.f32 %v928_v21, %v927_v12 }
 0x4e1   :  { %v954_v20 = vsel %vm34_vm0, %v943_v5, 0.0 }
 0x4e2   :  { %v935_v4 = vrot.slane %v934_v18, 4  ;;  %v956_v23 = vadd.f32 %v955_v19, %v954_v20  ;;  %v951_v29 = vadd.f32 %v950_v22, %v949_v15  ;;  %v930_v32 = vrot.slane %v929_v26, 1 }
 0x4e4   :  { %v936_v24 = vadd.f32 %v935_v4, %v934_v18  ;;  %v957_v25 = vrot.slane %v956_v23, 4  ;;  %v952_v56 = vrot.slane %v951_v29, 1  ;;  %v931_v37 = vadd.f32 %v930_v32, %v929_v26 }
 0x4e6   :  { %v937_v27 = vrot.slane %v936_v24, 2  ;;  %v958_v28 = vadd.f32 %v957_v25, %v956_v23  ;;  %v953_v53 = vadd.f32 %v952_v56, %v951_v29 }
 0x4e8   :  { %v938_v30 = vadd.f32 %v937_v27, %v936_v24  ;;  %v959_v31 = vrot.slane %v958_v28, 2 }
 0x4ea   :  { %v939_v33 = vrot.slane %v938_v30, 1  ;;  %v960_v34 = vadd.f32 %v959_v31, %v958_v28 }
 0x4ec   :  { %v940_v35 = vadd.f32 %v939_v33, %v938_v30  ;;  %v961_v36 = vrot.slane %v960_v34, 1 }
 0x4ee   :  { %v962_v14 = vadd.f32 %v961_v36, %v960_v34  ;;  %v965_v38 = vsel %vm77_vm2, %v940_v35, %v931_v37  ;;  %v2027_v37 = vld [vmem:[%s2806_s4 + $0x40] sm:$0xff] }
 0x4ef   :  { %2135 = vmatprep.subr.mxu0 %v2027_v37 }
 0x4f0   :  { %v969_v9 = vsel %vm82_vm3, %v962_v14, %v953_v53  ;;  %v2026_v53 = vld [vmem:[%s2806_s4 + $0x38] sm:$0xff]  ;;  %2136 = vmatpush3.msra.mxu0 %v2027_v37 }
 0x4f1   :  { %v971_v39 = vsel %vm85_vm4, %v965_v38, %v969_v9  ;;  %2137 = vmatprep.subr.mxu0 %v2026_v53 }
 0x4f2   :  { %2133 = vmatmul.mubr.msk.f32.vlgmr.msra.gmra.mxu1 %vm34_vm0, %v971_v39  ;;  %2138 = vmatpush3.msra.mxu0 %v2026_v53  ;;  %v2025_v39 = vld [vmem:[%s2806_s4 + $0x30] sm:$0xff] }
 0x4f3   :  { %2148 = vmatpush3.msra.mxu1 %v2307_v1  ;;  %2149 = vmatprep.mubr.msk.f32.mxu1 %vm2254_vm1, %v2253_v0  ;;  %v2024_v0 = vld [vmem:[%s2805_s3 + $0x2] ss:$0 sm:$0xff] }
 0x4f4   :  { %2139 = vmatprep.subr.mxu0 %v2025_v39 }
 0x4f5   :  { %2140 = vmatpush3.msra.mxu0 %v2025_v39 }
 0x5b2   :  { %v1041_v40 = vpop.f32.mrf.mxu1 }
 0x5b3   :  { %v1045_v41 = vmul.f32 0.03125, %v1041_v40 }
 0x5b4   :  { %v2134_v42 = vpop.f32.mrf.mxu1 }
 0x5b5   :  { %v1046_v43 = vmul.f32 %v1045_v41, %v1045_v41 }
 0x5b7   :  { %v1048_v44 = vrot.slane %v1046_v43, 6 }
 0x5b9   :  { %v1050_v45 = vsub.f32 %v1045_v41, %v1048_v44 }
 0x5bb   :  { %v1051_v46 = vadd.f32 1e-05, %v1050_v45 }
 0x5bd   :  { %2217 = vrsqrt.f32 %v1051_v46 }
 0x5ca   :  { %v2218_v49 = vpop.eup %2217 }
 0x5cb   :  { %v1061_v50 = vmul.f32 %v2218_v49, %v2022_v47 }
 0x5cd   :  { %v1065_v52 = vrot.slane %v1061_v50, 2  ;;  %v1081_v1 = vrot.slane %v1061_v50, %v2363_v62 }
 0x5cf   :  { %v1067_v54 = vmul.f32 %v1065_v52, %v1045_v41  ;;  %v1082_v55 = vcombine.high %v1081_v1, %v1081_v1  ;;  %v1089_v57 = vrot.slane %v1081_v1, %v2363_v62 }
 0x5d1   :  { %v1074_v58 = vsub.f32 %v2024_v0, %v1067_v54  ;;  %v1096_v3 = vrot.slane %v1082_v55, %v2363_v62  ;;  %v1097_v59 = vcombine.high %v1089_v57, %v1089_v57 }
 0x5d3   :  { %v1098_v60 = vcombine.high %v1096_v3, %v1096_v3  ;;  %v1102_v61 = vrot.slane %v1097_v59, %v2370_v13  ;;  %v1120_v63 = vrot.slane %v1074_v58, %v2363_v62 }
 0x5d5   :  { %v1121_v2 = vcombine.high %v1120_v63, %v1120_v63  ;;  %v1128_v7 = vrot.slane %v1120_v63, %v2363_v62  ;;  %v1106_v8 = vrot.slane %v1098_v60, %v2370_v13  ;;  %v1109_v10 = vmul.f32 %v1102_v61, %v2539_v51 }
 0x5d6   :  { %v1110_v16 = vmul.f32 %v1102_v61, %v2534_v48 }
 0x5d7   :  { %v1135_v12 = vrot.slane %v1121_v2, %v2363_v62  ;;  %v1139_v15 = vrot.slane %v1128_v7, %v2370_v13  ;;  %v1111_v17 = vmul.f32 %v1106_v8, %v2555_v11  ;;  %v1112_v19 = vmul.f32 %v1106_v8, %v2550_v6 }
 0x5d9   :  { %v1146_v5 = vadd.f32 %v1139_v15, %v1109_v10  ;;  %v1147_v18 = vadd.f32 %v1139_v15, %v1110_v16  ;;  %v1143_v20 = vrot.slane %v1135_v12, %v2370_v13 }
 0x5db   :  { %v1150_v21 = vsub.f32 0.0, %v1146_v5  ;;  %v1151_v22 = vsub.f32 0.0, %v1147_v18  ;;  %v1148_v4 = vadd.f32 %v1143_v20, %v1111_v17  ;;  %v1149_v23 = vadd.f32 %v1143_v20, %v1112_v19 }
 0x5dd   :  { %v1154_v24 = vmul.f32 1.442695, %v1150_v21  ;;  %v1156_v25 = vmul.f32 1.442695, %v1151_v22  ;;  %v1152_v26 = vsub.f32 0.0, %v1148_v4  ;;  %v1153_v27 = vsub.f32 0.0, %v1149_v23 }
 0x5df   :  { %2219 = vpow2.f32 %v1154_v24  ;;  %v1158_v28 = vmul.f32 1.442695, %v1152_v26  ;;  %v1160_v29 = vmul.f32 1.442695, %v1153_v27 }
 0x5e0   :  { %2221 = vpow2.f32 %v1156_v25 }
 0x5e1   :  { %2223 = vpow2.f32 %v1158_v28 }
 0x5e2   :  { %2225 = vpow2.f32 %v1160_v29 }
 0x5ec   :  { %v2220_v30 = vpop.eup %2219 }
 0x5ed   :  { %v2222_v31 = vpop.eup %2221  ;;  %v1162_v32 = vadd.f32 1.0, %v2220_v30 }
 0x5ee   :  { %v2224_v33 = vpop.eup %2223  ;;  %v1163_v56 = vadd.f32 1.0, %v2222_v31 }
 0x5ef   :  { %v2226_v34 = vpop.eup %2225  ;;  %2227 = vrcp.f32 %v1162_v32  ;;  %v1164_v35 = vadd.f32 1.0, %v2224_v33 }
 0x5f0   :  { %2229 = vrcp.f32 %v1163_v56  ;;  %v1165_v36 = vadd.f32 1.0, %v2226_v34 }
 0x5f1   :  { %2231 = vrcp.f32 %v1164_v35 }
 0x5f2   :  { %2233 = vrcp.f32 %v1165_v36  ;;  %v2029_v36 = vld [vmem:[%s2807_s5 + $0x2] ss:$0 sm:$0xff] }
 0x5fc   :  { %v2228_v14 = vpop.eup %2227 }
 0x5fd   :  { %v2230_v38 = vpop.eup %2229  ;;  %v1174_v9 = vmul.f32 %v2228_v14, %v1146_v5 }
 0x5fe   :  { %v2232_v40 = vpop.eup %2231  ;;  %v1175_v41 = vmul.f32 %v2230_v38, %v1147_v18 }
 0x5ff   :  { %v2234_v42 = vpop.eup %2233  ;;  %v1182_v43 = vrot.slane %v1174_v9, 7  ;;  %v1176_v44 = vmul.f32 %v2232_v40, %v1148_v4 }
 0x600   :  { %v1183_v45 = vrot.slane %v1175_v41, 7  ;;  %v1177_v46 = vmul.f32 %v2234_v42, %v1149_v23 }
 0x601   :  { %v1194_v47 = vsel %vm295_vm5, 0.0, %v1182_v43  ;;  %v1185_v1 = vrot.slane %v1176_v44, 7 }
 0x602   :  { %v1184_v49 = vsel %vm295_vm5, %v1182_v43, %v1183_v45  ;;  %v1196_v50 = vsel %vm295_vm5, %v1183_v45, 0.0  ;;  %v1202_v52 = vrot.slane %v1194_v47, 1  ;;  %v1186_v58 = vrot.slane %v1177_v46, 7 }
 0x603   :  { %v1203_v0 = vrot.slane %v1184_v49, 1  ;;  %v1205_v54 = vrot.slane %v1196_v50, 1  ;;  %v1225_v55 = vrot.slane %v1184_v49, 2  ;;  %v1227_v57 = vrot.slane %v1196_v50, 2 }
 0x604   :  { %v1224_v60 = vrot.slane %v1194_v47, 2  ;;  %v1187_v61 = vsel %vm295_vm5, %v1185_v1, %v1186_v58  ;;  %v1197_v63 = vsel %vm295_vm5, %v1186_v58, 0.0  ;;  %v1195_v2 = vsel %vm295_vm5, 0.0, %v1185_v1 }
 0x605   :  { %v1206_v3 = vsel %vm316_vm7, %v1203_v0, %v1205_v54  ;;  %v1204_v59 = vsel %vm316_vm7, %v1202_v52, %v1203_v0  ;;  %v1228_v7 = vsel %vm339_vm6, %v1225_v55, %v1227_v57  ;;  %v1208_v10 = vrot.slane %v1187_v61, 1 }
 0x606   :  { %1214 = vrot.lane.b32.xlu1 %v1206_v3, %s2257_s24  ;;  %1212 = vrot.lane.b32.xlu0 %v1204_v59, %s2257_s24  ;;  %v1226_v8 = vsel %vm339_vm6, %v1224_v60, %v1225_v55  ;;  %v1210_v12 = vrot.slane %v1197_v63, 1  ;;  %v1207_v15 = vrot.slane %v1195_v2, 1  ;;  %v1229_v16 = vrot.slane %v1195_v2, 2 }
 0x607   :  { %v1230_v18 = vrot.slane %v1187_v61, 2  ;;  %v1232_v19 = vrot.slane %v1197_v63, 2 }
 0x608   :  { %v1211_v17 = vsel %vm316_vm7, %v1208_v10, %v1210_v12  ;;  %v1209_v5 = vsel %vm316_vm7, %v1207_v15, %v1208_v10 }
 0x609   :  { %v1233_v20 = vsel %vm339_vm6, %v1230_v18, %v1232_v19  ;;  %v1231_v21 = vsel %vm339_vm6, %v1229_v16, %v1230_v18 }
 0x60a   :  { %1236 = vrot.lane.b32.xlu1 %v1228_v7, %s2256_s23  ;;  %1234 = vrot.lane.b32.xlu0 %v1226_v8, %s2256_s23 }
 0x60e   :  { %1218 = vrot.lane.b32.xlu1 %v1211_v17, %s2257_s24  ;;  %1216 = vrot.lane.b32.xlu0 %v1209_v5, %s2257_s24 }
 0x612   :  { %1240 = vrot.lane.b32.xlu1 %v1233_v20, %s2256_s23  ;;  %1238 = vrot.lane.b32.xlu0 %v1231_v21, %s2256_s23 }
 0x678   :  { %v1215_v22 = vpop.permute.xlu1 %1214  ;;  %v1213_v4 = vpop.permute.xlu0 %1212 }
 0x679   :  { %v1247_v23 = vsel %vm34_vm0, %v1184_v49, %v1215_v22  ;;  %v1246_v24 = vsel %vm34_vm0, %v1194_v47, %v1213_v4 }
 0x67c   :  { %v1237_v25 = vpop.permute.xlu1 %1236  ;;  %v1235_v26 = vpop.permute.xlu0 %1234 }
 0x67d   :  { %v1251_v27 = vsel %vm366_vm8, %v1247_v23, %v1237_v25  ;;  %v1250_v28 = vsel %vm366_vm8, %v1246_v24, %v1235_v26 }
 0x67e   :  { %2141 = vmatprep.mubr.msk.f32.mxu0 %vm381_vm9, %v1250_v28 }
 0x67f   :  { %2142 = vmatmul.mubr.msk.f32.vlgmr.msra.gmra.mxu0 %vm381_vm9, %v1251_v27 }
 0x680   :  { %v1219_v29 = vpop.permute.xlu1 %1218  ;;  %v1217_v30 = vpop.permute.xlu0 %1216 }
 0x681   :  { %v1249_v31 = vsel %vm34_vm0, %v1187_v61, %v1219_v29  ;;  %v1248_v32 = vsel %vm34_vm0, %v1195_v2, %v1217_v30 }
 0x684   :  { %v1241_v33 = vpop.permute.xlu1 %1240  ;;  %v1239_v56 = vpop.permute.xlu0 %1238 }
 0x685   :  { %v1253_v34 = vsel %vm366_vm8, %v1249_v31, %v1241_v33  ;;  %v1252_v35 = vsel %vm366_vm8, %v1248_v32, %v1239_v56 }
 0x686   :  { %2144 = vmatprep.mubr.msk.f32.mxu0 %vm381_vm9, %v1252_v35 }
 0x687   :  { %2145 = vmatmul.mubr.msk.f32.gmra.mxu0 %vm381_vm9, %v1253_v34 }
 0x73f   :  { %v2143_v37 = vpop.f32.mrf.mxu0 }
 0x740   :  { %v2638_v53 = vadd.f32 %v2143_v37, %v2029_v36  ;;  %v2036_v37 = vld [vmem:[%s2804_s2 + $0x3] ss:$0 sm:$0xff] }
 0x741   :  { %v1344_v14 = vpop.f32.mrf.mxu0 }
 0x742   :  { %v1382_v38 = vmul.f32 %v2638_v53, %v2638_v53  ;;  %v2642_v9 = vadd.f32 %v2029_v36, %v1344_v14  ;;  %v1364_v39 = vsel %vm34_vm0, %v2638_v53, 0.0 }
 0x744   :  { %v1363_v40 = vsel %vm34_vm0, %v2642_v9, 0.0  ;;  %v1381_v41 = vmul.f32 %v2642_v9, %v2642_v9  ;;  %v1386_v43 = vsel %vm34_vm0, %v1382_v38, 0.0 }
 0x745   :  { %v1365_v42 = vadd.f32 %v1364_v39, %v1363_v40 }
 0x746   :  { %v1385_v44 = vsel %vm34_vm0, %v1381_v41, 0.0  ;;  %v2038_v41 = vld [vmem:[%s2805_s3 + $0x3] ss:$0 sm:$0xff] }
 0x747   :  { %v1366_v45 = vrot.slane %v1365_v42, 4  ;;  %v1387_v46 = vadd.f32 %v1386_v43, %v1385_v44  ;;  %v2146_v47 = vpop.f32.mrf.mxu0 }
 0x748   :  { %v2652_v49 = vadd.f32 %v2146_v47, %v2029_v36 }
 0x749   :  { %v1388_v50 = vrot.slane %v1387_v46, 4  ;;  %v1354_v52 = vpop.f32.mrf.mxu0  ;;  %v1367_v54 = vadd.f32 %v1366_v45, %v1365_v42 }
 0x74a   :  { %v1384_v1 = vmul.f32 %v2652_v49, %v2652_v49  ;;  %v2656_v0 = vadd.f32 %v2029_v36, %v1354_v52  ;;  %v1373_v57 = vsel %vm34_vm0, %v2652_v49, 0.0 }
 0x74b   :  { %v1389_v55 = vadd.f32 %v1388_v50, %v1387_v46  ;;  %v1368_v63 = vrot.slane %v1367_v54, 2 }
 0x74c   :  { %v1372_v58 = vsel %vm34_vm0, %v2656_v0, 0.0  ;;  %v1383_v3 = vmul.f32 %v2656_v0, %v2656_v0  ;;  %v1395_v60 = vsel %vm34_vm0, %v1384_v1, 0.0 }
 0x74d   :  { %v1374_v59 = vadd.f32 %v1373_v57, %v1372_v58  ;;  %v1390_v2 = vrot.slane %v1389_v55, 2  ;;  %v1369_v15 = vadd.f32 %v1368_v63, %v1367_v54 }
 0x74e   :  { %v1394_v61 = vsel %vm34_vm0, %v1383_v3, 0.0 }
 0x74f   :  { %v1375_v7 = vrot.slane %v1374_v59, 4  ;;  %v1396_v8 = vadd.f32 %v1395_v60, %v1394_v61  ;;  %v1391_v16 = vadd.f32 %v1390_v2, %v1389_v55  ;;  %v1370_v20 = vrot.slane %v1369_v15, 1 }
 0x751   :  { %v1376_v10 = vadd.f32 %v1375_v7, %v1374_v59  ;;  %v1397_v12 = vrot.slane %v1396_v8, 4  ;;  %v1392_v21 = vrot.slane %v1391_v16, 1  ;;  %v1371_v25 = vadd.f32 %v1370_v20, %v1369_v15 }
 0x753   :  { %v1377_v17 = vrot.slane %v1376_v10, 2  ;;  %v1398_v5 = vadd.f32 %v1397_v12, %v1396_v8  ;;  %v1393_v26 = vadd.f32 %v1392_v21, %v1391_v16 }
 0x755   :  { %v1378_v18 = vadd.f32 %v1377_v17, %v1376_v10  ;;  %v1399_v19 = vrot.slane %v1398_v5, 2 }
 0x757   :  { %v1379_v22 = vrot.slane %v1378_v18, 1  ;;  %v1400_v4 = vadd.f32 %v1399_v19, %v1398_v5 }
 0x759   :  { %v1380_v23 = vadd.f32 %v1379_v22, %v1378_v18  ;;  %v1401_v24 = vrot.slane %v1400_v4, 1 }
 0x75b   :  { %v1402_v27 = vadd.f32 %v1401_v24, %v1400_v4  ;;  %v1405_v28 = vsel %vm77_vm2, %v1380_v23, %v1371_v25  ;;  %v2041_v23 = vld [vmem:[%s2806_s4 + $0x58] sm:$0xff]  ;;  %v2040_v24 = vld [vmem:[%s2806_s4 + $0x50] sm:$0xff] }
 0x75c   :  { %2152 = vmatprep.subr.mxu1 %v2041_v23 }
 0x75d   :  { %v1409_v29 = vsel %vm82_vm3, %v1402_v27, %v1393_v26 }
 0x75e   :  { %v1411_v30 = vsel %vm85_vm4, %v1405_v28, %v1409_v29  ;;  %v2039_v28 = vld [vmem:[%s2806_s4 + $0x48] sm:$0xff] }
 0x75f   :  { %2150 = vmatmul.mubr.msk.f32.vlgmr.msra.gmra.mxu1 %vm34_vm0, %v1411_v30 }
 0x760   :  { %2153 = vmatpush3.msra.mxu1 %v2041_v23  ;;  %v1885_v23 = vld [vmem:[%s2808_s6 + $0x10] sm:$0xff] }
 0x761   :  { %2154 = vmatprep.subr.mxu1 %v2040_v24  ;;  %2164 = vmatprep.subr.mxu0 %v1885_v23 }
 0x762   :  { %2155 = vmatpush3.msra.mxu1 %v2040_v24  ;;  %v1884_v24 = vld [vmem:[%s2808_s6 + $0x8] sm:$0xff]  ;;  %2165 = vmatpush3.msra.mxu0 %v1885_v23 }
 0x763   :  { %2156 = vmatprep.subr.mxu1 %v2039_v28  ;;  %2166 = vmatprep.subr.mxu0 %v1884_v24 }
 0x764   :  { %2157 = vmatpush3.msra.mxu1 %v2039_v28  ;;  %v1883_v28 = vld [vmem:[%s2808_s6] sm:$0xff]  ;;  %2167 = vmatpush3.msra.mxu0 %v1884_v24 }
 0x765   :  { %2168 = vmatprep.subr.mxu0 %v1883_v28 }
 0x766   :  { %2169 = vmatpush3.msra.mxu0 %v1883_v28 }
 0x81f   :  { %v1481_v31 = vpop.f32.mrf.mxu1 }
 0x820   :  { %v1485_v32 = vmul.f32 0.03125, %v1481_v31 }
 0x821   :  { %v2151_v33 = vpop.f32.mrf.mxu1 }
 0x822   :  { %v1486_v56 = vmul.f32 %v1485_v32, %v1485_v32 }
 0x824   :  { %v1488_v34 = vrot.slane %v1486_v56, 6 }
 0x826   :  { %v1490_v35 = vsub.f32 %v1485_v32, %v1488_v34 }
 0x828   :  { %v1491_v36 = vadd.f32 1e-05, %v1490_v35 }
 0x82a   :  { %2235 = vrsqrt.f32 %v1491_v36 }
 0x837   :  { %v2236_v14 = vpop.eup %2235 }
 0x838   :  { %v1501_v38 = vmul.f32 %v2236_v14, %v2036_v37 }
 0x83a   :  { %v1505_v39 = vrot.slane %v1501_v38, 2  ;;  %v1521_v40 = vrot.slane %v1501_v38, %v2363_v62 }
 0x83c   :  { %v1507_v42 = vmul.f32 %v1505_v39, %v1485_v32  ;;  %v1522_v43 = vcombine.high %v1521_v40, %v1521_v40  ;;  %v1529_v44 = vrot.slane %v1521_v40, %v2363_v62 }
 0x83e   :  { %v1514_v45 = vsub.f32 %v2038_v41, %v1507_v42  ;;  %v1536_v46 = vrot.slane %v1522_v43, %v2363_v62  ;;  %v1537_v47 = vcombine.high %v1529_v44, %v1529_v44 }
 0x840   :  { %v1538_v50 = vcombine.high %v1536_v46, %v1536_v46  ;;  %v1542_v52 = vrot.slane %v1537_v47, %v2370_v13  ;;  %v1560_v1 = vrot.slane %v1514_v45, %v2363_v62 }
 0x842   :  { %v1561_v54 = vcombine.high %v1560_v1, %v1560_v1  ;;  %v1568_v55 = vrot.slane %v1560_v1, %v2363_v62  ;;  %v1546_v57 = vrot.slane %v1538_v50, %v2370_v13  ;;  %v1549_v58 = vmul.f32 %v1542_v52, %v2642_v9 }
 0x843   :  { %v1550_v60 = vmul.f32 %v1542_v52, %v2638_v53 }
 0x844   :  { %v1575_v3 = vrot.slane %v1561_v54, %v2363_v62  ;;  %v1579_v59 = vrot.slane %v1568_v55, %v2370_v13  ;;  %v1551_v61 = vmul.f32 %v1546_v57, %v2656_v0  ;;  %v1552_v7 = vmul.f32 %v1546_v57, %v2652_v49 }
 0x846   :  { %v1586_v63 = vadd.f32 %v1579_v59, %v1549_v58  ;;  %v1587_v2 = vadd.f32 %v1579_v59, %v1550_v60  ;;  %v1583_v8 = vrot.slane %v1575_v3, %v2370_v13 }
 0x848   :  { %v1590_v10 = vsub.f32 0.0, %v1586_v63  ;;  %v1591_v12 = vsub.f32 0.0, %v1587_v2  ;;  %v1588_v15 = vadd.f32 %v1583_v8, %v1551_v61  ;;  %v1589_v16 = vadd.f32 %v1583_v8, %v1552_v7 }
 0x84a   :  { %v1594_v17 = vmul.f32 1.442695, %v1590_v10  ;;  %v1596_v9 = vmul.f32 1.442695, %v1591_v12  ;;  %v1592_v5 = vsub.f32 0.0, %v1588_v15  ;;  %v1593_v62 = vsub.f32 0.0, %v1589_v16 }
 0x84c   :  { %2237 = vpow2.f32 %v1594_v17  ;;  %v1598_v18 = vmul.f32 1.442695, %v1592_v5  ;;  %v1600_v19 = vmul.f32 1.442695, %v1593_v62 }
 0x84d   :  { %2239 = vpow2.f32 %v1596_v9 }
 0x84e   :  { %2241 = vpow2.f32 %v1598_v18 }
 0x84f   :  { %2243 = vpow2.f32 %v1600_v19 }
 0x859   :  { %v2238_v53 = vpop.eup %2237 }
 0x85a   :  { %v2240_v0 = vpop.eup %2239  ;;  %v1602_v20 = vadd.f32 1.0, %v2238_v53 }
 0x85b   :  { %v2242_v49 = vpop.eup %2241  ;;  %v1603_v21 = vadd.f32 1.0, %v2240_v0 }
 0x85c   :  { %v2244_v13 = vpop.eup %2243  ;;  %2245 = vrcp.f32 %v1602_v20  ;;  %v1604_v22 = vadd.f32 1.0, %v2242_v49 }
 0x85d   :  { %2247 = vrcp.f32 %v1603_v21  ;;  %v1605_v4 = vadd.f32 1.0, %v2244_v13  ;;  %v2043_v13 = vld [vmem:[%s2807_s5 + $0x3] ss:$0 sm:$0xff] }
 0x85e   :  { %2249 = vrcp.f32 %v1604_v22 }
 0x85f   :  { %2251 = vrcp.f32 %v1605_v4 }
 0x869   :  { %v2246_v25 = vpop.eup %2245 }
 0x86a   :  { %v2248_v26 = vpop.eup %2247  ;;  %v1614_v27 = vmul.f32 %v2246_v25, %v1586_v63 }
 0x86b   :  { %v2250_v29 = vpop.eup %2249  ;;  %v1615_v30 = vmul.f32 %v2248_v26, %v1587_v2 }
 0x86c   :  { %v2252_v31 = vpop.eup %2251  ;;  %v1622_v32 = vrot.slane %v1614_v27, 7  ;;  %v1616_v33 = vmul.f32 %v2250_v29, %v1588_v15 }
 0x86d   :  { %v1623_v56 = vrot.slane %v1615_v30, 7  ;;  %v1617_v34 = vmul.f32 %v2252_v31, %v1589_v16 }
 0x86e   :  { %v1634_v35 = vsel %vm295_vm5, 0.0, %v1622_v32  ;;  %v1625_v38 = vrot.slane %v1616_v33, 7 }
 0x86f   :  { %v1624_v36 = vsel %vm295_vm5, %v1622_v32, %v1623_v56  ;;  %v1636_v37 = vsel %vm295_vm5, %v1623_v56, 0.0  ;;  %v1642_v14 = vrot.slane %v1634_v35, 1  ;;  %v1626_v43 = vrot.slane %v1617_v34, 7 }
 0x870   :  { %v1643_v39 = vrot.slane %v1624_v36, 1  ;;  %v1645_v40 = vrot.slane %v1636_v37, 1  ;;  %v1665_v41 = vrot.slane %v1624_v36, 2  ;;  %v1667_v42 = vrot.slane %v1636_v37, 2 }
 0x871   :  { %v1664_v46 = vrot.slane %v1634_v35, 2  ;;  %v1627_v47 = vsel %vm295_vm5, %v1625_v38, %v1626_v43  ;;  %v1637_v50 = vsel %vm295_vm5, %v1626_v43, 0.0  ;;  %v1635_v52 = vsel %vm295_vm5, 0.0, %v1625_v38 }
 0x872   :  { %v1646_v44 = vsel %vm316_vm7, %v1643_v39, %v1645_v40  ;;  %v1644_v45 = vsel %vm316_vm7, %v1642_v14, %v1643_v39  ;;  %v1668_v1 = vsel %vm339_vm6, %v1665_v41, %v1667_v42  ;;  %v1648_v55 = vrot.slane %v1627_v47, 1 }
 0x873   :  { %1654 = vrot.lane.b32.xlu1 %v1646_v44, %s2257_s24  ;;  %1652 = vrot.lane.b32.xlu0 %v1644_v45, %s2257_s24  ;;  %v1666_v54 = vsel %vm339_vm6, %v1664_v46, %v1665_v41  ;;  %v1650_v57 = vrot.slane %v1637_v50, 1  ;;  %v1647_v58 = vrot.slane %v1635_v52, 1  ;;  %v1669_v3 = vrot.slane %v1635_v52, 2 }
 0x874   :  { %v1670_v61 = vrot.slane %v1627_v47, 2  ;;  %v1672_v63 = vrot.slane %v1637_v50, 2 }
 0x875   :  { %v1651_v59 = vsel %vm316_vm7, %v1648_v55, %v1650_v57  ;;  %v1649_v60 = vsel %vm316_vm7, %v1647_v58, %v1648_v55 }
 0x876   :  { %v1673_v2 = vsel %vm339_vm6, %v1670_v61, %v1672_v63  ;;  %v1671_v7 = vsel %vm339_vm6, %v1669_v3, %v1670_v61 }
 0x877   :  { %1676 = vrot.lane.b32.xlu1 %v1668_v1, %s2256_s23  ;;  %1674 = vrot.lane.b32.xlu0 %v1666_v54, %s2256_s23 }
 0x87b   :  { %1658 = vrot.lane.b32.xlu1 %v1651_v59, %s2257_s24  ;;  %1656 = vrot.lane.b32.xlu0 %v1649_v60, %s2257_s24 }
 0x87f   :  { %1680 = vrot.lane.b32.xlu1 %v1673_v2, %s2256_s23  ;;  %1678 = vrot.lane.b32.xlu0 %v1671_v7, %s2256_s23 }
 0x8e5   :  { %v1655_v8 = vpop.permute.xlu1 %1654  ;;  %v1653_v10 = vpop.permute.xlu0 %1652 }
 0x8e6   :  { %v1687_v12 = vsel %vm34_vm0, %v1624_v36, %v1655_v8  ;;  %v1686_v15 = vsel %vm34_vm0, %v1634_v35, %v1653_v10 }
 0x8e9   :  { %v1677_v16 = vpop.permute.xlu1 %1676  ;;  %v1675_v17 = vpop.permute.xlu0 %1674 }
 0x8ea   :  { %v1691_v9 = vsel %vm366_vm8, %v1687_v12, %v1677_v16  ;;  %v1690_v5 = vsel %vm366_vm8, %v1686_v15, %v1675_v17 }
 0x8eb   :  { %2158 = vmatprep.mubr.msk.f32.mxu1 %vm381_vm9, %v1690_v5 }
 0x8ec   :  { %2159 = vmatmul.mubr.msk.f32.vlgmr.msra.gmra.mxu1 %vm381_vm9, %v1691_v9 }
 0x8ed   :  { %v1659_v62 = vpop.permute.xlu1 %1658  ;;  %v1657_v18 = vpop.permute.xlu0 %1656 }
 0x8ee   :  { %v1689_v19 = vsel %vm34_vm0, %v1627_v47, %v1659_v62  ;;  %v1688_v53 = vsel %vm34_vm0, %v1635_v52, %v1657_v18 }
 0x8f1   :  { %v1681_v0 = vpop.permute.xlu1 %1680  ;;  %v1679_v20 = vpop.permute.xlu0 %1678 }
 0x8f2   :  { %v1693_v49 = vsel %vm366_vm8, %v1689_v19, %v1681_v0  ;;  %v1692_v21 = vsel %vm366_vm8, %v1688_v53, %v1679_v20 }
 0x8f3   :  { %2161 = vmatprep.mubr.msk.f32.mxu1 %vm381_vm9, %v1692_v21 }
 0x8f4   :  { %2162 = vmatmul.mubr.msk.f32.gmra.mxu1 %vm381_vm9, %v1693_v49  ;;  %v2048_v49 = vld [vmem:[%s2809_s7] ss:$0 sm:$0xff] }
 0x9ac   :  { %v2160_v22 = vpop.f32.mrf.mxu1 }
 0x9ad   :  { %v1790_v4 = vadd.f32 %v2160_v22, %v2043_v13 }
 0x9ae   :  { %v1784_v25 = vpop.f32.mrf.mxu1 }
 0x9af   :  { %v1804_v26 = vadd.f32 %v1790_v4, %v2534_v48  ;;  %v1785_v27 = vadd.f32 %v2043_v13, %v1784_v25 }
 0x9b1   :  { %v1812_v29 = vrot.slane %v1804_v26, 7  ;;  %v1803_v30 = vadd.f32 %v1785_v27, %v2539_v51 }
 0x9b3   :  { %v1825_v31 = vsel %vm295_vm5, %v1812_v29, 0.0  ;;  %v1811_v32 = vrot.slane %v1803_v30, 7 }
 0x9b4   :  { %v2163_v33 = vpop.f32.mrf.mxu1  ;;  %v1834_v35 = vrot.slane %v1825_v31, 1  ;;  %v1856_v45 = vrot.slane %v1825_v31, 2 }
 0x9b5   :  { %v1813_v56 = vsel %vm295_vm5, %v1811_v32, %v1812_v29  ;;  %v1823_v48 = vsel %vm295_vm5, 0.0, %v1811_v32  ;;  %v1800_v34 = vadd.f32 %v2163_v33, %v2043_v13 }
 0x9b6   :  { %v1794_v36 = vpop.f32.mrf.mxu1  ;;  %v1832_v37 = vrot.slane %v1813_v56, 1  ;;  %v1831_v14 = vrot.slane %v1823_v48, 1  ;;  %v1854_v41 = vrot.slane %v1813_v56, 2  ;;  %v1853_v42 = vrot.slane %v1823_v48, 2 }
 0x9b7   :  { %v1806_v38 = vadd.f32 %v1800_v34, %v2550_v6  ;;  %v1795_v39 = vadd.f32 %v2043_v13, %v1794_v36 }
 0x9b8   :  { %v1835_v51 = vsel %vm316_vm7, %v1832_v37, %v1834_v35  ;;  %v1833_v40 = vsel %vm316_vm7, %v1831_v14, %v1832_v37  ;;  %v1857_v6 = vsel %vm339_vm6, %v1854_v41, %v1856_v45  ;;  %v1855_v50 = vsel %vm339_vm6, %v1853_v42, %v1854_v41 }
 0x9b9   :  { %v1815_v43 = vrot.slane %v1806_v38, 7  ;;  %v1805_v44 = vadd.f32 %v1795_v39, %v2555_v11  ;;  %1843 = vrot.lane.b32.xlu1 %v1835_v51, %s2257_s24  ;;  %1841 = vrot.lane.b32.xlu0 %v1833_v40, %s2257_s24 }
 0x9bb   :  { %v1826_v46 = vsel %vm295_vm5, %v1815_v43, 0.0  ;;  %v1814_v47 = vrot.slane %v1805_v44, 7 }
 0x9bc   :  { %v1839_v11 = vrot.slane %v1826_v46, 1  ;;  %v1861_v60 = vrot.slane %v1826_v46, 2 }
 0x9bd   :  { %v1816_v52 = vsel %vm295_vm5, %v1814_v47, %v1815_v43  ;;  %v1824_v1 = vsel %vm295_vm5, 0.0, %v1814_v47  ;;  %1865 = vrot.lane.b32.xlu1 %v1857_v6, %s2256_s23  ;;  %1863 = vrot.lane.b32.xlu0 %v1855_v50, %s2256_s23 }
 0x9be   :  { %v1837_v54 = vrot.slane %v1816_v52, 1  ;;  %v1836_v55 = vrot.slane %v1824_v1, 1  ;;  %v1859_v3 = vrot.slane %v1816_v52, 2  ;;  %v1858_v59 = vrot.slane %v1824_v1, 2 }
 0x9c0   :  { %v1840_v57 = vsel %vm316_vm7, %v1837_v54, %v1839_v11  ;;  %v1838_v58 = vsel %vm316_vm7, %v1836_v55, %v1837_v54  ;;  %v1862_v61 = vsel %vm339_vm6, %v1859_v3, %v1861_v60  ;;  %v1860_v63 = vsel %vm339_vm6, %v1858_v59, %v1859_v3 }
 0x9c1   :  { %1847 = vrot.lane.b32.xlu1 %v1840_v57, %s2257_s24  ;;  %1845 = vrot.lane.b32.xlu0 %v1838_v58, %s2257_s24 }
 0x9c5   :  { %1869 = vrot.lane.b32.xlu1 %v1862_v61, %s2256_s23  ;;  %1867 = vrot.lane.b32.xlu0 %v1860_v63, %s2256_s23 }
 0xa2b   :  { %v1844_v2 = vpop.permute.xlu1 %1843  ;;  %v1842_v7 = vpop.permute.xlu0 %1841 }
 0xa2c   :  { %v1876_v8 = vsel %vm34_vm0, %v1813_v56, %v1844_v2  ;;  %v1875_v10 = vsel %vm34_vm0, %v1823_v48, %v1842_v7 }
 0xa2f   :  { %v1866_v12 = vpop.permute.xlu1 %1865  ;;  %v1864_v15 = vpop.permute.xlu0 %1863 }
 0xa30   :  { %v1880_v16 = vsel %vm366_vm8, %v1876_v8, %v1866_v12  ;;  %v1879_v17 = vsel %vm366_vm8, %v1875_v10, %v1864_v15 }
 0xa31   :  { %2170 = vmatprep.mubr.msk.f32.mxu0 %vm381_vm9, %v1879_v17 }
 0xa32   :  { %2171 = vmatmul.mubr.msk.f32.vlgmr.msra.gmra.mxu0 %vm381_vm9, %v1880_v16 }
 0xa33   :  { %v1848_v9 = vpop.permute.xlu1 %1847  ;;  %v1846_v5 = vpop.permute.xlu0 %1845 }
 0xa34   :  { %v1878_v62 = vsel %vm34_vm0, %v1816_v52, %v1848_v9  ;;  %v1877_v18 = vsel %vm34_vm0, %v1824_v1, %v1846_v5 }
 0xa37   :  { %v1870_v19 = vpop.permute.xlu1 %1869  ;;  %v1868_v53 = vpop.permute.xlu0 %1867 }
 0xa38   :  { %v1882_v0 = vsel %vm366_vm8, %v1878_v62, %v1870_v19  ;;  %v1881_v20 = vsel %vm366_vm8, %v1877_v18, %v1868_v53 }
 0xa39   :  { %2173 = vmatprep.mubr.msk.f32.mxu0 %vm381_vm9, %v1881_v20 }
 0xa3a   :  { %2174 = vmatmul.mubr.msk.f32.gmra.mxu0 %vm381_vm9, %v1882_v0 }
 0xaf2   :  { %v2172_v21 = vpop.f32.mrf.mxu0 }
 0xaf3   :  { %v1977_v13 = vadd.f32 %v2172_v21, %v2048_v49 }
 0xaf4   :  { %v1971_v22 = vpop.f32.mrf.mxu0 }
 0xaf5   :  { %1991 = vst.msk [vmem:[%s2810_s8 + $0x8] sm:$0xff] %vm34_vm0, %v1977_v13  ;;  %v1972_v4 = vadd.f32 %v2048_v49, %v1971_v22 }
 0xaf7   :  { %1990 = vst.msk [vmem:[%s2810_s8] sm:$0xff] %vm34_vm0, %v1972_v4 }
 0xafa   :  { %v2175_v23 = vpop.f32.mrf.mxu0 }
 0xafb   :  { %v1987_v24 = vadd.f32 %v2175_v23, %v2048_v49 }
 0xafc   :  { %v1981_v25 = vpop.f32.mrf.mxu0 }
 0xafd   :  { %1993 = vst.msk [vmem:[%s2810_s8 + $0x18] sm:$0xff] %vm34_vm0, %v1987_v24  ;;  %v1982_v26 = vadd.f32 %v2048_v49, %v1981_v25 }
 0xaff   :  { %1992 = vst.msk [vmem:[%s2810_s8 + $0x10] sm:$0xff] %vm34_vm0, %v1982_v26 }

</bundles_post_ra>
